<compile_context>
chip_gen: v7x
topology: tpu7x:2x2x1
jax: 0.10.0
libtpu: 0.0.40
codegen_flags: <defaults>
</compile_context>

<pallas_src>
import functools

import jax
import jax.numpy as jnp
from jax.experimental import pallas as pl
from jax.experimental.pallas import tpu as pltpu


_F32 = jnp.float32
_BF16 = jnp.bfloat16
_ROW_ALIGN = 16          # bf16 packs 16 rows / vreg -> keep row offsets multiples of 16


# ------------------------------------------------------------------ small helpers

def _round_up(x, m):
    return ((x + m - 1) // m) * m


def _pad2(a, rows, cols, dtype):
    out = jnp.zeros((rows, cols), dtype)
    return out.at[: a.shape[0], : a.shape[1]].set(a.astype(dtype))


def _row_tiling(n, tile_n):
    """(padded node count, effective row tile) — shared by builder and wrapper."""
    t = min(_round_up(tile_n, _ROW_ALIGN), _round_up(n, _ROW_ALIGN))
    return _round_up(n, t), t


def padded_num_nodes(n, tile_n=256):
    """Node padding the kernel expects for the L_hat operand."""
    return _row_tiling(n, tile_n)[0]


def _vmem_capacity_bytes():
    try:
        return int(pltpu.get_tpu_info().vmem_capacity_bytes)
    except Exception:                       # conservative default: v7x (64 MiB)
        return 64 << 20


def _const_spec(shape, single_buffer):
    """Full-array block at a constant grid index (VMEM-resident weights / operands).
    These blocks never change across the grid, so single-buffer them when requested."""
    index_map = lambda *_: (0,) * len(shape)
    if single_buffer:
        return pl.BlockSpec(shape, index_map, pipeline_mode=pl.Buffered(1))
    return pl.BlockSpec(shape, index_map)


# ------------------------------------------------------------------ in-kernel math

def _cheb_tile(rows, lhat_rows, full, w_stack, b):
    """ChebConv (K=2) on one row tile: [rows | L_hat_rows @ full] @ [W0; W1] + b.
    bf16 operands, f32 MXU accumulation.  NOTE(v5e): on the 128-deep MXU two separate
    dots summed would avoid the concat; the stacked K contraction matches v6e/v7x."""
    prop = jnp.dot(lhat_rows, full, preferred_element_type=_F32)
    t = jnp.concatenate([rows, prop.astype(_BF16)], axis=-1)
    return jnp.dot(t, w_stack, preferred_element_type=_F32) + b


def _projector_tile(z, wp1, bp1, wp2, bp2):
    """Assumed Projector: Linear -> ReLU -> Linear (see TODO)."""
    p1 = jnp.maximum(
        jnp.dot(z.astype(_BF16), wp1, preferred_element_type=_F32) + bp1, 0.0)
    return jnp.dot(p1.astype(_BF16), wp2, preferred_element_type=_F32) + bp2


# ------------------------------------------------------------------ Pallas kernels

def _fused_kernel(lhat_ref, x_ref, w1s_ref, b1_ref, wp1_ref, bp1_ref, wp2_ref,
                  bp2_ref, w2s_ref, b2_ref, z_ref, proj_ref, recon_ref, h_scr):
    """Single-call path: grid (2, n_tiles).  Phase 0 = conv1 + projector (fills the
    persistent h scratch), phase 1 = conv2.  L_hat / x / weights are VMEM-resident."""
    phase = pl.program_id(0)
    tile_n = z_ref.shape[0]
    row0 = pl.multiple_of(pl.program_id(1) * tile_n, tile_n)
    lhat_rows = lhat_ref[pl.ds(row0, tile_n), :]            # (tile_n, n_p)

    @pl.when(phase == 0)
    def _conv1_and_projector():
        z = _cheb_tile(x_ref[pl.ds(row0, tile_n), :], lhat_rows, x_ref[...],
                       w1s_ref[...], b1_ref[...])
        z_ref[...] = z
        h_scr[pl.ds(row0, tile_n), :] = jnp.maximum(z, 0.0).astype(_BF16)
        proj_ref[...] = _projector_tile(z, wp1_ref[...], bp1_ref[...],
                                        wp2_ref[...], bp2_ref[...])

    @pl.when(phase == 1)
    def _conv2():
        recon_ref[...] = _cheb_tile(h_scr[pl.ds(row0, tile_n), :], lhat_rows,
                                    h_scr[...], w2s_ref[...], b2_ref[...])


def _conv1_proj_kernel(lhat_ref, x_ref, w1s_ref, b1_ref, wp1_ref, bp1_ref,
                       wp2_ref, bp2_ref, z_ref, proj_ref, h_ref):
    """Streamed phase 1 (L_hat row tile from HBM): conv1 + projector."""
    tile_n = z_ref.shape[0]
    row0 = pl.multiple_of(pl.program_id(0) * tile_n, tile_n)
    z = _cheb_tile(x_ref[pl.ds(row0, tile_n), :], lhat_ref[...], x_ref[...],
                   w1s_ref[...], b1_ref[...])
    z_ref[...] = z
    h_ref[...] = jnp.maximum(z, 0.0).astype(_BF16)
    proj_ref[...] = _projector_tile(z, wp1_ref[...], bp1_ref[...],
                                    wp2_ref[...], bp2_ref[...])


def _conv2_kernel(lhat_ref, h_ref, w2s_ref, b2_ref, recon_ref):
    """Streamed phase 2 (L_hat row tile from HBM): conv2."""
    tile_n = recon_ref.shape[0]
    row0 = pl.multiple_of(pl.program_id(0) * tile_n, tile_n)
    recon_ref[...] = _cheb_tile(h_ref[pl.ds(row0, tile_n), :], lhat_ref[...],
                                h_ref[...], w2s_ref[...], b2_ref[...])


# ------------------------------------------------------------------ wrapper

def cheb_anomaly_detector(lhat_p, x, params, *, tile_n=256, single_buffer_consts=True):
    """Forward pass -> (reconstruction, z, projection).

    lhat_p : [n_p, n_p] bf16 scaled Laplacian padded to padded_num_nodes(n, tile_n).
    Uses a single fused pallas_call (L_hat read from HBM once) when it fits VMEM,
    otherwise a two-call path streaming L_hat row tiles (twice) with a 'parallel' grid.
    """
    n, fin = x.shape
    hidden = params["w10"].shape[1]
    n_p, tile_n = _row_tiling(n, tile_n)
    if lhat_p.shape != (n_p, n_p):
        raise ValueError(f"lhat_p must be padded to {(n_p, n_p)}, got {lhat_p.shape}; "
                         "use padded_num_nodes() with the same tile_n.")

    fp = _round_up(fin, 128)          # lane-pad feature / hidden dims -> unmasked stores
    hp = _round_up(hidden, 128)
    n_tiles = n_p // tile_n

    # ---- padded / cast operands (bf16 matmul operands, f32 biases)
    x_p = _pad2(x, n_p, fp, _BF16)
    w1s = jnp.concatenate([_pad2(params["w10"], fp, hp, _BF16),
                           _pad2(params["w11"], fp, hp, _BF16)], axis=0)   # [2*Fp, Hp]
    b1 = _pad2(params["b1"], 1, hp, _F32)
    w2s = jnp.concatenate([_pad2(params["w20"], hp, fp, _BF16),
                           _pad2(params["w21"], hp, fp, _BF16)], axis=0)   # [2*Hp, Fp]
    b2 = _pad2(params["b2"], 1, fp, _F32)
    wp1 = _pad2(params["wp1"], hp, hp, _BF16)
    bp1 = _pad2(params["bp1"], 1, hp, _F32)
    wp2 = _pad2(params["wp2"], hp, hp, _BF16)
    bp2 = _pad2(params["bp2"], 1, hp, _F32)

    const = functools.partial(_const_spec, single_buffer=single_buffer_consts)
    cbuf = 1 if single_buffer_consts else 2
    weight_bytes = (2 * fp * hp + 2 * hp * fp + 2 * hp * hp) * 2 + (3 * hp + fp) * 4
    out_bytes = 2 * tile_n * (2 * hp + fp) * 4          # double-buffered f32 out tiles
    vmem_cap = _vmem_capacity_bytes()

    # ---------------------------------------------------------------- fused path
    fused_need = (cbuf * (n_p * n_p + n_p * fp) * 2     # resident L_hat + x (bf16)
                  + n_p * hp * 2                        # persistent h scratch (bf16)
                  + cbuf * weight_bytes + out_bytes)
    if fused_need <= int(0.75 * vmem_cap):
        last = n_tiles - 1
        limit = int(min(vmem_cap, max(32 << 20, fused_need * 13 // 10)))
        z, proj, recon = pl.pallas_call(
            _fused_kernel,
            grid=(2, n_tiles),                          # phase axis first (slow)
            out_shape=(jax.ShapeDtypeStruct((n_p, hp), _F32),    # z  (latent)
                       jax.ShapeDtypeStruct((n_p, hp), _F32),    # projector(z)
                       jax.ShapeDtypeStruct((n_p, fp), _F32)),   # reconstruction
            in_specs=[const((n_p, n_p)),                # L_hat: HBM -> VMEM once
                      const((n_p, fp)),                 # x
                      const((2 * fp, hp)), const((1, hp)),         # conv1
                      const((hp, hp)), const((1, hp)),             # projector L1
                      const((hp, hp)), const((1, hp)),             # projector L2
                      const((2 * hp, fp)), const((1, fp))],        # conv2
            out_specs=(
                # z / proj written only in phase 0; parked on the last (already
                # written) tile during phase 1 so no stale buffer is written back.
                pl.BlockSpec((tile_n, hp), lambda p, i: (i * (1 - p) + last * p, 0)),
                pl.BlockSpec((tile_n, hp), lambda p, i: (i * (1 - p) + last * p, 0)),
                # recon written only in phase 1; parked on tile 0 during phase 0.
                pl.BlockSpec((tile_n, fp), lambda p, i: (i * p, 0)),
            ),
            scratch_shapes=[pltpu.VMEM((n_p, hp), _BF16)],         # h = relu(z)
            compiler_params=pltpu.CompilerParams(
                dimension_semantics=("arbitrary", "arbitrary"),
                vmem_limit_bytes=limit),
        )(lhat_p, x_p, w1s, b1, wp1, bp1, wp2, bp2, w2s, b2)
        return recon[:n, :fin], z[:n, :hidden], proj[:n, :hidden]

    # ---------------------------------------------------------------- streamed path
    if n_tiles == 1 and tile_n % (2 * _ROW_ALIGN) == 0:
        tile_n //= 2                      # >= 2 grid steps so both v7x TCs get work
        n_tiles = n_p // tile_n

    row_tile = lambda c: pl.BlockSpec((tile_n, c), lambda i: (i, 0))
    lhat_tile = pl.BlockSpec((tile_n, n_p), lambda i: (i, 0))
    stream_need = (2 * tile_n * n_p * 2                 # double-buffered L_hat tile
                   + cbuf * (n_p * max(fp, hp) * 2 + weight_bytes) + out_bytes)
    limit = int(min(vmem_cap, max(32 << 20, stream_need * 13 // 10)))
    cparams = pltpu.CompilerParams(dimension_semantics=("parallel",),
                                   vmem_limit_bytes=limit)

    z, proj, h = pl.pallas_call(
        _conv1_proj_kernel,
        grid=(n_tiles,),
        out_shape=(jax.ShapeDtypeStruct((n_p, hp), _F32),
                   jax.ShapeDtypeStruct((n_p, hp), _F32),
                   jax.ShapeDtypeStruct((n_p, hp), _BF16)),
        in_specs=[lhat_tile, const((n_p, fp)),
                  const((2 * fp, hp)), const((1, hp)),
                  const((hp, hp)), const((1, hp)),
                  const((hp, hp)), const((1, hp))],
        out_specs=(row_tile(hp), row_tile(hp), row_tile(hp)),
        compiler_params=cparams,
    )(lhat_p, x_p, w1s, b1, wp1, bp1, wp2, bp2)

    recon = pl.pallas_call(
        _conv2_kernel,
        grid=(n_tiles,),
        out_shape=jax.ShapeDtypeStruct((n_p, fp), _F32),
        in_specs=[lhat_tile, const((n_p, hp)),
                  const((2 * hp, fp)), const((1, fp))],
        out_specs=row_tile(fp),
        compiler_params=cparams,
    )(lhat_p, h, w2s, b2)

    return recon[:n, :fin], z[:n, :hidden], proj[:n, :hidden]


# ------------------------------------------------------------------ glue (plain JAX)

def build_scaled_laplacian(edge_index, num_nodes, num_nodes_padded=None):
    """Dense L_hat = 2L/lambda_max - I with lambda_max=2.0 -> -D^{-1/2} A D^{-1/2}.
    Built directly as the lane-padded bf16 [n_p, n_p] kernel operand (no separate
    f32 [N, N] materialization + cast).  Assumes edge_index holds both directions
    of every undirected edge (as PyG's 'sym' normalization does)."""
    n_p = num_nodes if num_nodes_padded is None else num_nodes_padded
    src, dst = edge_index[0], edge_index[1]
    w = jnp.where(src != dst, 1.0, 0.0).astype(jnp.float32)     # drop self loops
    deg = jnp.zeros((num_nodes,), jnp.float32).at[src].add(w)
    dinv = jnp.where(deg > 0, 1.0 / jnp.sqrt(deg), 0.0)
    vals = (-w * dinv[src] * dinv[dst]).astype(_BF16)
    return jnp.zeros((n_p, n_p), _BF16).at[dst, src].add(vals)


def init_params(key, in_channels, hidden_channels):
    def glorot(k, shape):
        limit = jnp.sqrt(6.0 / (shape[0] + shape[1]))
        return jax.random.uniform(k, shape, jnp.float32, -limit, limit)

    ks = jax.random.split(key, 6)
    return {
        # ChebConv1: in -> hidden, K=2 (two weight mats + bias)
        "w10": glorot(ks[0], (in_channels, hidden_channels)),
        "w11": glorot(ks[1], (in_channels, hidden_channels)),
        "b1": jnp.zeros((1, hidden_channels), jnp.float32),
        # ChebConv2: hidden -> in, K=2
        "w20": glorot(ks[2], (hidden_channels, in_channels)),
        "w21": glorot(ks[3], (hidden_channels, in_channels)),
        "b2": jnp.zeros((1, in_channels), jnp.float32),
        # Projector: Linear(H,H) -> ReLU -> Linear(H,H)  (assumed, see TODO)
        "wp1": glorot(ks[4], (hidden_channels, hidden_channels)),
        "bp1": jnp.zeros((1, hidden_channels), jnp.float32),
        "wp2": glorot(ks[5], (hidden_channels, hidden_channels)),
        "bp2": jnp.zeros((1, hidden_channels), jnp.float32),
    }


def reference_forward(lhat, x, p):
    """Pure-JAX reference mirroring the kernel numerics (bf16 operands, f32 accum)."""
    bf, f32 = jnp.bfloat16, jnp.float32
    dot = lambda a, b: jnp.dot(a.astype(bf), b.astype(bf), preferred_element_type=f32)
    lx = dot(lhat, x)
    z = dot(x, p["w10"]) + dot(lx, p["w11"]) + p["b1"]
    h = jnp.maximum(z, 0.0)
    lh = dot(lhat, h)
    recon = dot(h, p["w20"]) + dot(lh, p["w21"]) + p["b2"]
    p1 = jnp.maximum(dot(z, p["wp1"]) + p["bp1"], 0.0)
    proj = dot(p1, p["wp2"]) + p["bp2"]
    return recon, z, proj


# ------------------------------------------------------------------ main

if __name__ == "__main__":
    N = 16            # number of graph nodes
    IN_CHANNELS = 4
    HIDDEN = 32

    key = jax.random.PRNGKey(0)
    k_x, k_p = jax.random.split(key)

    # node features [N, in_channels]
    x = jax.random.normal(k_x, (N, IN_CHANNELS), jnp.float32)

    # undirected ring graph, edge_index [2, 2N]
    idx = jnp.arange(N)
    src = jnp.concatenate([idx, (idx + 1) % N])
    dst = jnp.concatenate([(idx + 1) % N, idx])
    edge_index = jnp.stack([src, dst], axis=0).astype(jnp.int32)

    n_p = padded_num_nodes(N)
    # edge_index is static -> lhat_p can be built once and cached across forward calls
    lhat_p = build_scaled_laplacian(edge_index, N, n_p)
    params = init_params(k_p, IN_CHANNELS, HIDDEN)

    fwd = jax.jit(cheb_anomaly_detector)
    try:
        recon, z, proj = jax.block_until_ready(fwd(lhat_p, x, params))
    except Exception:
        # pipeline_mode=pl.Buffered(1) not supported on this JAX build ->
        # fall back to default double-buffered constant blocks (same semantics).
        fwd = jax.jit(functools.partial(cheb_anomaly_detector,
                                        single_buffer_consts=False))
        recon, z, proj = jax.block_until_ready(fwd(lhat_p, x, params))

    recon_ref, z_ref, proj_ref = reference_forward(lhat_p[:N, :N], x, params)
    assert recon.shape == (N, IN_CHANNELS)
    assert z.shape == (N, HIDDEN)
    assert proj.shape == (N, HIDDEN)
    assert jnp.allclose(recon, recon_ref, atol=1e-2, rtol=1e-2)
    assert jnp.allclose(z, z_ref, atol=1e-2, rtol=1e-2)
    assert jnp.allclose(proj, proj_ref, atol=1e-2, rtol=1e-2)

    print("KERNEL_OK")
</pallas_src>

<mosaic_0001>
module attributes {stable_mosaic.version = 11 : i64} {
  func.func @_fused_kernel(%arg0: i32, %arg1: i32, %arg2: memref<16x16xbf16, #tpu.memory_space<vmem>>, %arg3: memref<16x128xbf16, #tpu.memory_space<vmem>>, %arg4: memref<256x128xbf16, #tpu.memory_space<vmem>>, %arg5: memref<1x128xf32, #tpu.memory_space<vmem>>, %arg6: memref<128x128xbf16, #tpu.memory_space<vmem>>, %arg7: memref<1x128xf32, #tpu.memory_space<vmem>>, %arg8: memref<128x128xbf16, #tpu.memory_space<vmem>>, %arg9: memref<1x128xf32, #tpu.memory_space<vmem>>, %arg10: memref<256x128xbf16, #tpu.memory_space<vmem>>, %arg11: memref<1x128xf32, #tpu.memory_space<vmem>>, %arg12: memref<16x128xf32, #tpu.memory_space<vmem>>, %arg13: memref<16x128xf32, #tpu.memory_space<vmem>>, %arg14: memref<16x128xf32, #tpu.memory_space<vmem>>, %arg15: memref<16x128xbf16, #tpu.memory_space<vmem>>) attributes {dimension_semantics = [#tpu.dimension_semantics<arbitrary>, #tpu.dimension_semantics<arbitrary>], iteration_bounds = array<i64: 2, 1>, scalar_prefetch = 0 : i64, scratch_operands = 1 : i64, tpu.core_type = #tpu.core_type<tc>, window_params = [{pipeline_mode = #tpu.pipeline_mode<synchronous>, transform_indices = @transform_0, window_bounds = array<i64: 16, 16>}, {pipeline_mode = #tpu.pipeline_mode<synchronous>, transform_indices = @transform_1, window_bounds = array<i64: 16, 128>}, {pipeline_mode = #tpu.pipeline_mode<synchronous>, transform_indices = @transform_2, window_bounds = array<i64: 256, 128>}, {pipeline_mode = #tpu.pipeline_mode<synchronous>, transform_indices = @transform_3, window_bounds = array<i64: 1, 128>}, {pipeline_mode = #tpu.pipeline_mode<synchronous>, transform_indices = @transform_4, window_bounds = array<i64: 128, 128>}, {pipeline_mode = #tpu.pipeline_mode<synchronous>, transform_indices = @transform_5, window_bounds = array<i64: 1, 128>}, {pipeline_mode = #tpu.pipeline_mode<synchronous>, transform_indices = @transform_6, window_bounds = array<i64: 128, 128>}, {pipeline_mode = #tpu.pipeline_mode<synchronous>, transform_indices = @transform_7, window_bounds = array<i64: 1, 128>}, {pipeline_mode = #tpu.pipeline_mode<synchronous>, transform_indices = @transform_8, window_bounds = array<i64: 256, 128>}, {pipeline_mode = #tpu.pipeline_mode<synchronous>, transform_indices = @transform_9, window_bounds = array<i64: 1, 128>}, {transform_indices = @transform_10, window_bounds = array<i64: 16, 128>}, {transform_indices = @transform_11, window_bounds = array<i64: 16, 128>}, {transform_indices = @transform_12, window_bounds = array<i64: 16, 128>}]} {
    %c16_i32 = arith.constant 16 : i32
    %0 = arith.muli %arg1, %c16_i32 : i32
    %1 = tpu.assume_multiple %0, 16 : i32
    %2 = arith.index_cast %1 : i32 to index
    %c0 = arith.constant 0 : index
    %3 = vector.load %arg2[%2, %c0] : memref<16x16xbf16, #tpu.memory_space<vmem>>, vector<16x16xbf16>
    %c0_i32 = arith.constant 0 : i32
    %4 = arith.cmpi eq, %arg0, %c0_i32 : i32
    %5 = arith.extui %4 : i1 to i32
    %c0_i32_0 = arith.constant 0 : i32
    %6 = arith.cmpi ne, %5, %c0_i32_0 : i32
    scf.if %6 {
      %10 = arith.index_cast %1 : i32 to index
      %c0_2 = arith.constant 0 : index
      %11 = vector.load %arg3[%10, %c0_2] : memref<16x128xbf16, #tpu.memory_space<vmem>>, vector<16x128xbf16>
      %c0_3 = arith.constant 0 : index
      %c0_4 = arith.constant 0 : index
      %12 = vector.load %arg3[%c0_3, %c0_4] : memref<16x128xbf16, #tpu.memory_space<vmem>>, vector<16x128xbf16>
      %c0_5 = arith.constant 0 : index
      %c0_6 = arith.constant 0 : index
      %13 = vector.load %arg4[%c0_5, %c0_6] : memref<256x128xbf16, #tpu.memory_space<vmem>>, vector<256x128xbf16>
      %c0_7 = arith.constant 0 : index
      %c0_8 = arith.constant 0 : index
      %14 = vector.load %arg5[%c0_7, %c0_8] : memref<1x128xf32, #tpu.memory_space<vmem>>, vector<1x128xf32>
      %cst = arith.constant dense<0.000000e+00> : vector<16x128xf32>
      %15 = tpu.matmul %3, %12, %cst {dimension_numbers = #tpu.dot_dimension_numbers<[1], [0], [0], [1], [0, 0, 1, 1], [], []>} : vector<16x16xbf16>, vector<16x128xbf16>, vector<16x128xf32> -> vector<16x128xf32>
      %16 = arith.truncf %15 : vector<16x128xf32> to vector<16x128xbf16>
      %17 = tpu.concatenate %11, %16 in 1 : vector<16x128xbf16>, vector<16x128xbf16> -> vector<16x256xbf16>
      %cst_9 = arith.constant dense<0.000000e+00> : vector<16x128xf32>
      %18 = tpu.matmul %17, %13, %cst_9 {dimension_numbers = #tpu.dot_dimension_numbers<[1], [0], [0], [1], [0, 0, 1, 1], [], []>} : vector<16x256xbf16>, vector<256x128xbf16>, vector<16x128xf32> -> vector<16x128xf32>
      %19 = vector.broadcast %14 : vector<1x128xf32> to vector<16x128xf32>
      %20 = arith.addf %18, %19 : vector<16x128xf32>
      %c0_10 = arith.constant 0 : index
      %c0_11 = arith.constant 0 : index
      %21 = vector.load %arg12[%c0_10, %c0_11] : memref<16x128xf32, #tpu.memory_space<vmem>>, vector<16x128xf32>
      tpu.vector_store %arg12[%c0_10, %c0_11], %20 {strides = array<i32>} : memref<16x128xf32, #tpu.memory_space<vmem>>, vector<16x128xf32>,
      %cst_12 = arith.constant 0.000000e+00 : f32
      %22 = vector.broadcast %cst_12 : f32 to vector<16x128xf32>
      %23 = arith.maximumf %20, %22 : vector<16x128xf32>
      %24 = arith.truncf %23 : vector<16x128xf32> to vector<16x128xbf16>
      %25 = arith.index_cast %1 : i32 to index
      %c0_13 = arith.constant 0 : index
      %26 = vector.load %arg15[%25, %c0_13] : memref<16x128xbf16, #tpu.memory_space<vmem>>, vector<16x128xbf16>
      tpu.vector_store %arg15[%25, %c0_13], %24 {strides = array<i32>} : memref<16x128xbf16, #tpu.memory_space<vmem>>, vector<16x128xbf16>,
      %c0_14 = arith.constant 0 : index
      %c0_15 = arith.constant 0 : index
      %27 = vector.load %arg6[%c0_14, %c0_15] : memref<128x128xbf16, #tpu.memory_space<vmem>>, vector<128x128xbf16>
      %c0_16 = arith.constant 0 : index
      %c0_17 = arith.constant 0 : index
      %28 = vector.load %arg7[%c0_16, %c0_17] : memref<1x128xf32, #tpu.memory_space<vmem>>, vector<1x128xf32>
      %c0_18 = arith.constant 0 : index
      %c0_19 = arith.constant 0 : index
      %29 = vector.load %arg8[%c0_18, %c0_19] : memref<128x128xbf16, #tpu.memory_space<vmem>>, vector<128x128xbf16>
      %c0_20 = arith.constant 0 : index
      %c0_21 = arith.constant 0 : index
      %30 = vector.load %arg9[%c0_20, %c0_21] : memref<1x128xf32, #tpu.memory_space<vmem>>, vector<1x128xf32>
      %31 = arith.truncf %20 : vector<16x128xf32> to vector<16x128xbf16>
      %cst_22 = arith.constant dense<0.000000e+00> : vector<16x128xf32>
      %32 = tpu.matmul %31, %27, %cst_22 {dimension_numbers = #tpu.dot_dimension_numbers<[1], [0], [0], [1], [0, 0, 1, 1], [], []>} : vector<16x128xbf16>, vector<128x128xbf16>, vector<16x128xf32> -> vector<16x128xf32>
      %33 = vector.broadcast %28 : vector<1x128xf32> to vector<16x128xf32>
      %34 = arith.addf %32, %33 : vector<16x128xf32>
      %cst_23 = arith.constant 0.000000e+00 : f32
      %35 = vector.broadcast %cst_23 : f32 to vector<16x128xf32>
      %36 = arith.maximumf %34, %35 : vector<16x128xf32>
      %37 = arith.truncf %36 : vector<16x128xf32> to vector<16x128xbf16>
      %cst_24 = arith.constant dense<0.000000e+00> : vector<16x128xf32>
      %38 = tpu.matmul %37, %29, %cst_24 {dimension_numbers = #tpu.dot_dimension_numbers<[1], [0], [0], [1], [0, 0, 1, 1], [], []>} : vector<16x128xbf16>, vector<128x128xbf16>, vector<16x128xf32> -> vector<16x128xf32>
      %39 = vector.broadcast %30 : vector<1x128xf32> to vector<16x128xf32>
      %40 = arith.addf %38, %39 : vector<16x128xf32>
      %c0_25 = arith.constant 0 : index
      %c0_26 = arith.constant 0 : index
      %41 = vector.load %arg13[%c0_25, %c0_26] : memref<16x128xf32, #tpu.memory_space<vmem>>, vector<16x128xf32>
      tpu.vector_store %arg13[%c0_25, %c0_26], %40 {strides = array<i32>} : memref<16x128xf32, #tpu.memory_space<vmem>>, vector<16x128xf32>,
    } else {
    }
    %c1_i32 = arith.constant 1 : i32
    %7 = arith.cmpi eq, %arg0, %c1_i32 : i32
    %8 = arith.extui %7 : i1 to i32
    %c0_i32_1 = arith.constant 0 : i32
    %9 = arith.cmpi ne, %8, %c0_i32_1 : i32
    scf.if %9 {
      %10 = arith.index_cast %1 : i32 to index
      %c0_2 = arith.constant 0 : index
      %11 = vector.load %arg15[%10, %c0_2] : memref<16x128xbf16, #tpu.memory_space<vmem>>, vector<16x128xbf16>
      %c0_3 = arith.constant 0 : index
      %c0_4 = arith.constant 0 : index
      %12 = vector.load %arg15[%c0_3, %c0_4] : memref<16x128xbf16, #tpu.memory_space<vmem>>, vector<16x128xbf16>
      %c0_5 = arith.constant 0 : index
      %c0_6 = arith.constant 0 : index
      %13 = vector.load %arg10[%c0_5, %c0_6] : memref<256x128xbf16, #tpu.memory_space<vmem>>, vector<256x128xbf16>
      %c0_7 = arith.constant 0 : index
      %c0_8 = arith.constant 0 : index
      %14 = vector.load %arg11[%c0_7, %c0_8] : memref<1x128xf32, #tpu.memory_space<vmem>>, vector<1x128xf32>
      %cst = arith.constant dense<0.000000e+00> : vector<16x128xf32>
      %15 = tpu.matmul %3, %12, %cst {dimension_numbers = #tpu.dot_dimension_numbers<[1], [0], [0], [1], [0, 0, 1, 1], [], []>} : vector<16x16xbf16>, vector<16x128xbf16>, vector<16x128xf32> -> vector<16x128xf32>
      %16 = arith.truncf %15 : vector<16x128xf32> to vector<16x128xbf16>
      %17 = tpu.concatenate %11, %16 in 1 : vector<16x128xbf16>, vector<16x128xbf16> -> vector<16x256xbf16>
      %cst_9 = arith.constant dense<0.000000e+00> : vector<16x128xf32>
      %18 = tpu.matmul %17, %13, %cst_9 {dimension_numbers = #tpu.dot_dimension_numbers<[1], [0], [0], [1], [0, 0, 1, 1], [], []>} : vector<16x256xbf16>, vector<256x128xbf16>, vector<16x128xf32> -> vector<16x128xf32>
      %19 = vector.broadcast %14 : vector<1x128xf32> to vector<16x128xf32>
      %20 = arith.addf %18, %19 : vector<16x128xf32>
      %c0_10 = arith.constant 0 : index
      %c0_11 = arith.constant 0 : index
      %21 = vector.load %arg14[%c0_10, %c0_11] : memref<16x128xf32, #tpu.memory_space<vmem>>, vector<16x128xf32>
      tpu.vector_store %arg14[%c0_10, %c0_11], %20 {strides = array<i32>} : memref<16x128xf32, #tpu.memory_space<vmem>>, vector<16x128xf32>,
    } else {
    }
    return
  }
  func.func @transform_0(%arg0: i32, %arg1: i32) -> (i32, i32) {
    %c0_i32 = arith.constant 0 : i32
    %c0_i32_0 = arith.constant 0 : i32
    %c0_i32_1 = arith.constant 0 : i32
    return %c0_i32, %c0_i32_0 : i32, i32
  }
  func.func @transform_1(%arg0: i32, %arg1: i32) -> (i32, i32) {
    %c0_i32 = arith.constant 0 : i32
    %c0_i32_0 = arith.constant 0 : i32
    %c0_i32_1 = arith.constant 0 : i32
    return %c0_i32, %c0_i32_0 : i32, i32
  }
  func.func @transform_2(%arg0: i32, %arg1: i32) -> (i32, i32) {
    %c0_i32 = arith.constant 0 : i32
    %c0_i32_0 = arith.constant 0 : i32
    %c0_i32_1 = arith.constant 0 : i32
    return %c0_i32, %c0_i32_0 : i32, i32
  }
  func.func @transform_3(%arg0: i32, %arg1: i32) -> (i32, i32) {
    %c0_i32 = arith.constant 0 : i32
    %c0_i32_0 = arith.constant 0 : i32
    %c0_i32_1 = arith.constant 0 : i32
    return %c0_i32, %c0_i32_0 : i32, i32
  }
  func.func @transform_4(%arg0: i32, %arg1: i32) -> (i32, i32) {
    %c0_i32 = arith.constant 0 : i32
    %c0_i32_0 = arith.constant 0 : i32
    %c0_i32_1 = arith.constant 0 : i32
    return %c0_i32, %c0_i32_0 : i32, i32
  }
  func.func @transform_5(%arg0: i32, %arg1: i32) -> (i32, i32) {
    %c0_i32 = arith.constant 0 : i32
    %c0_i32_0 = arith.constant 0 : i32
    %c0_i32_1 = arith.constant 0 : i32
    return %c0_i32, %c0_i32_0 : i32, i32
  }
  func.func @transform_6(%arg0: i32, %arg1: i32) -> (i32, i32) {
    %c0_i32 = arith.constant 0 : i32
    %c0_i32_0 = arith.constant 0 : i32
    %c0_i32_1 = arith.constant 0 : i32
    return %c0_i32, %c0_i32_0 : i32, i32
  }
  func.func @transform_7(%arg0: i32, %arg1: i32) -> (i32, i32) {
    %c0_i32 = arith.constant 0 : i32
    %c0_i32_0 = arith.constant 0 : i32
    %c0_i32_1 = arith.constant 0 : i32
    return %c0_i32, %c0_i32_0 : i32, i32
  }
  func.func @transform_8(%arg0: i32, %arg1: i32) -> (i32, i32) {
    %c0_i32 = arith.constant 0 : i32
    %c0_i32_0 = arith.constant 0 : i32
    %c0_i32_1 = arith.constant 0 : i32
    return %c0_i32, %c0_i32_0 : i32, i32
  }
  func.func @transform_9(%arg0: i32, %arg1: i32) -> (i32, i32) {
    %c0_i32 = arith.constant 0 : i32
    %c0_i32_0 = arith.constant 0 : i32
    %c0_i32_1 = arith.constant 0 : i32
    return %c0_i32, %c0_i32_0 : i32, i32
  }
  func.func @transform_10(%arg0: i32, %arg1: i32) -> (i32, i32) {
    %c1_i32 = arith.constant 1 : i32
    %0 = arith.subi %c1_i32, %arg0 : i32
    %1 = arith.muli %arg1, %0 : i32
    %c0_i32 = arith.constant 0 : i32
    %2 = arith.muli %c0_i32, %arg0 : i32
    %3 = arith.addi %1, %2 : i32
    %c0_i32_0 = arith.constant 0 : i32
    %c0_i32_1 = arith.constant 0 : i32
    return %3, %c0_i32_0 : i32, i32
  }
  func.func @transform_11(%arg0: i32, %arg1: i32) -> (i32, i32) {
    %c1_i32 = arith.constant 1 : i32
    %0 = arith.subi %c1_i32, %arg0 : i32
    %1 = arith.muli %arg1, %0 : i32
    %c0_i32 = arith.constant 0 : i32
    %2 = arith.muli %c0_i32, %arg0 : i32
    %3 = arith.addi %1, %2 : i32
    %c0_i32_0 = arith.constant 0 : i32
    %c0_i32_1 = arith.constant 0 : i32
    return %3, %c0_i32_0 : i32, i32
  }
  func.func @transform_12(%arg0: i32, %arg1: i32) -> (i32, i32) {
    %0 = arith.muli %arg1, %arg0 : i32
    %c0_i32 = arith.constant 0 : i32
    %c0_i32_0 = arith.constant 0 : i32
    return %0, %c0_i32 : i32, i32
  }
}

module attributes {stable_mosaic.version = 11 : i64} {
  func.func @_fused_kernel(%arg0: i32, %arg1: i32, %arg2: memref<16x16xbf16, #tpu.memory_space<vmem>>, %arg3: memref<16x128xbf16, #tpu.memory_space<vmem>>, %arg4: memref<256x128xbf16, #tpu.memory_space<vmem>>, %arg5: memref<1x128xf32, #tpu.memory_space<vmem>>, %arg6: memref<128x128xbf16, #tpu.memory_space<vmem>>, %arg7: memref<1x128xf32, #tpu.memory_space<vmem>>, %arg8: memref<128x128xbf16, #tpu.memory_space<vmem>>, %arg9: memref<1x128xf32, #tpu.memory_space<vmem>>, %arg10: memref<256x128xbf16, #tpu.memory_space<vmem>>, %arg11: memref<1x128xf32, #tpu.memory_space<vmem>>, %arg12: memref<16x128xf32, #tpu.memory_space<vmem>>, %arg13: memref<16x128xf32, #tpu.memory_space<vmem>>, %arg14: memref<16x128xf32, #tpu.memory_space<vmem>>, %arg15: memref<16x128xbf16, #tpu.memory_space<vmem>>) attributes {dimension_semantics = [#tpu.dimension_semantics<arbitrary>, #tpu.dimension_semantics<arbitrary>], iteration_bounds = array<i64: 2, 1>, scalar_prefetch = 0 : i64, scratch_operands = 1 : i64, tpu.core_type = #tpu.core_type<tc>, window_params = [{pipeline_mode = #tpu.pipeline_mode<synchronous>, transform_indices = @transform_0, window_bounds = array<i64: 16, 16>}, {pipeline_mode = #tpu.pipeline_mode<synchronous>, transform_indices = @transform_1, window_bounds = array<i64: 16, 128>}, {pipeline_mode = #tpu.pipeline_mode<synchronous>, transform_indices = @transform_2, window_bounds = array<i64: 256, 128>}, {pipeline_mode = #tpu.pipeline_mode<synchronous>, transform_indices = @transform_3, window_bounds = array<i64: 1, 128>}, {pipeline_mode = #tpu.pipeline_mode<synchronous>, transform_indices = @transform_4, window_bounds = array<i64: 128, 128>}, {pipeline_mode = #tpu.pipeline_mode<synchronous>, transform_indices = @transform_5, window_bounds = array<i64: 1, 128>}, {pipeline_mode = #tpu.pipeline_mode<synchronous>, transform_indices = @transform_6, window_bounds = array<i64: 128, 128>}, {pipeline_mode = #tpu.pipeline_mode<synchronous>, transform_indices = @transform_7, window_bounds = array<i64: 1, 128>}, {pipeline_mode = #tpu.pipeline_mode<synchronous>, transform_indices = @transform_8, window_bounds = array<i64: 256, 128>}, {pipeline_mode = #tpu.pipeline_mode<synchronous>, transform_indices = @transform_9, window_bounds = array<i64: 1, 128>}, {transform_indices = @transform_10, window_bounds = array<i64: 16, 128>}, {transform_indices = @transform_11, window_bounds = array<i64: 16, 128>}, {transform_indices = @transform_12, window_bounds = array<i64: 16, 128>}]} {
    %c16_i32 = arith.constant 16 : i32
    %0 = arith.muli %arg1, %c16_i32 : i32
    %1 = tpu.assume_multiple %0, 16 : i32
    %2 = arith.index_cast %1 : i32 to index
    %c0 = arith.constant 0 : index
    %3 = vector.load %arg2[%2, %c0] : memref<16x16xbf16, #tpu.memory_space<vmem>>, vector<16x16xbf16>
    %c0_i32 = arith.constant 0 : i32
    %4 = arith.cmpi eq, %arg0, %c0_i32 : i32
    %5 = arith.extui %4 : i1 to i32
    %c0_i32_0 = arith.constant 0 : i32
    %6 = arith.cmpi ne, %5, %c0_i32_0 : i32
    scf.if %6 {
      %10 = arith.index_cast %1 : i32 to index
      %c0_2 = arith.constant 0 : index
      %11 = vector.load %arg3[%10, %c0_2] : memref<16x128xbf16, #tpu.memory_space<vmem>>, vector<16x128xbf16>
      %c0_3 = arith.constant 0 : index
      %c0_4 = arith.constant 0 : index
      %12 = vector.load %arg3[%c0_3, %c0_4] : memref<16x128xbf16, #tpu.memory_space<vmem>>, vector<16x128xbf16>
      %c0_5 = arith.constant 0 : index
      %c0_6 = arith.constant 0 : index
      %13 = vector.load %arg4[%c0_5, %c0_6] : memref<256x128xbf16, #tpu.memory_space<vmem>>, vector<256x128xbf16>
      %c0_7 = arith.constant 0 : index
      %c0_8 = arith.constant 0 : index
      %14 = vector.load %arg5[%c0_7, %c0_8] : memref<1x128xf32, #tpu.memory_space<vmem>>, vector<1x128xf32>
      %cst = arith.constant dense<0.000000e+00> : vector<16x128xf32>
      %15 = tpu.matmul %3, %12, %cst {dimension_numbers = #tpu.dot_dimension_numbers<[1], [0], [0], [1], [0, 0, 1, 1], [], []>} : vector<16x16xbf16>, vector<16x128xbf16>, vector<16x128xf32> -> vector<16x128xf32>
      %16 = arith.truncf %15 : vector<16x128xf32> to vector<16x128xbf16>
      %17 = tpu.concatenate %11, %16 in 1 : vector<16x128xbf16>, vector<16x128xbf16> -> vector<16x256xbf16>
      %cst_9 = arith.constant dense<0.000000e+00> : vector<16x128xf32>
      %18 = tpu.matmul %17, %13, %cst_9 {dimension_numbers = #tpu.dot_dimension_numbers<[1], [0], [0], [1], [0, 0, 1, 1], [], []>} : vector<16x256xbf16>, vector<256x128xbf16>, vector<16x128xf32> -> vector<16x128xf32>
      %19 = vector.broadcast %14 : vector<1x128xf32> to vector<16x128xf32>
      %20 = arith.addf %18, %19 : vector<16x128xf32>
      %c0_10 = arith.constant 0 : index
      %c0_11 = arith.constant 0 : index
      %21 = vector.load %arg12[%c0_10, %c0_11] : memref<16x128xf32, #tpu.memory_space<vmem>>, vector<16x128xf32>
      tpu.vector_store %arg12[%c0_10, %c0_11], %20 {strides = array<i32>} : memref<16x128xf32, #tpu.memory_space<vmem>>, vector<16x128xf32>,
      %cst_12 = arith.constant 0.000000e+00 : f32
      %22 = vector.broadcast %cst_12 : f32 to vector<16x128xf32>
      %23 = arith.maximumf %20, %22 : vector<16x128xf32>
      %24 = arith.truncf %23 : vector<16x128xf32> to vector<16x128xbf16>
      %25 = arith.index_cast %1 : i32 to index
      %c0_13 = arith.constant 0 : index
      %26 = vector.load %arg15[%25, %c0_13] : memref<16x128xbf16, #tpu.memory_space<vmem>>, vector<16x128xbf16>
      tpu.vector_store %arg15[%25, %c0_13], %24 {strides = array<i32>} : memref<16x128xbf16, #tpu.memory_space<vmem>>, vector<16x128xbf16>,
      %c0_14 = arith.constant 0 : index
      %c0_15 = arith.constant 0 : index
      %27 = vector.load %arg6[%c0_14, %c0_15] : memref<128x128xbf16, #tpu.memory_space<vmem>>, vector<128x128xbf16>
      %c0_16 = arith.constant 0 : index
      %c0_17 = arith.constant 0 : index
      %28 = vector.load %arg7[%c0_16, %c0_17] : memref<1x128xf32, #tpu.memory_space<vmem>>, vector<1x128xf32>
      %c0_18 = arith.constant 0 : index
      %c0_19 = arith.constant 0 : index
      %29 = vector.load %arg8[%c0_18, %c0_19] : memref<128x128xbf16, #tpu.memory_space<vmem>>, vector<128x128xbf16>
      %c0_20 = arith.constant 0 : index
      %c0_21 = arith.constant 0 : index
      %30 = vector.load %arg9[%c0_20, %c0_21] : memref<1x128xf32, #tpu.memory_space<vmem>>, vector<1x128xf32>
      %31 = arith.truncf %20 : vector<16x128xf32> to vector<16x128xbf16>
      %cst_22 = arith.constant dense<0.000000e+00> : vector<16x128xf32>
      %32 = tpu.matmul %31, %27, %cst_22 {dimension_numbers = #tpu.dot_dimension_numbers<[1], [0], [0], [1], [0, 0, 1, 1], [], []>} : vector<16x128xbf16>, vector<128x128xbf16>, vector<16x128xf32> -> vector<16x128xf32>
      %33 = vector.broadcast %28 : vector<1x128xf32> to vector<16x128xf32>
      %34 = arith.addf %32, %33 : vector<16x128xf32>
      %cst_23 = arith.constant 0.000000e+00 : f32
      %35 = vector.broadcast %cst_23 : f32 to vector<16x128xf32>
      %36 = arith.maximumf %34, %35 : vector<16x128xf32>
      %37 = arith.truncf %36 : vector<16x128xf32> to vector<16x128xbf16>
      %cst_24 = arith.constant dense<0.000000e+00> : vector<16x128xf32>
      %38 = tpu.matmul %37, %29, %cst_24 {dimension_numbers = #tpu.dot_dimension_numbers<[1], [0], [0], [1], [0, 0, 1, 1], [], []>} : vector<16x128xbf16>, vector<128x128xbf16>, vector<16x128xf32> -> vector<16x128xf32>
      %39 = vector.broadcast %30 : vector<1x128xf32> to vector<16x128xf32>
      %40 = arith.addf %38, %39 : vector<16x128xf32>
      %c0_25 = arith.constant 0 : index
      %c0_26 = arith.constant 0 : index
      %41 = vector.load %arg13[%c0_25, %c0_26] : memref<16x128xf32, #tpu.memory_space<vmem>>, vector<16x128xf32>
      tpu.vector_store %arg13[%c0_25, %c0_26], %40 {strides = array<i32>} : memref<16x128xf32, #tpu.memory_space<vmem>>, vector<16x128xf32>,
    } else {
    }
    %c1_i32 = arith.constant 1 : i32
    %7 = arith.cmpi eq, %arg0, %c1_i32 : i32
    %8 = arith.extui %7 : i1 to i32
    %c0_i32_1 = arith.constant 0 : i32
    %9 = arith.cmpi ne, %8, %c0_i32_1 : i32
    scf.if %9 {
      %10 = arith.index_cast %1 : i32 to index
      %c0_2 = arith.constant 0 : index
      %11 = vector.load %arg15[%10, %c0_2] : memref<16x128xbf16, #tpu.memory_space<vmem>>, vector<16x128xbf16>
      %c0_3 = arith.constant 0 : index
      %c0_4 = arith.constant 0 : index
      %12 = vector.load %arg15[%c0_3, %c0_4] : memref<16x128xbf16, #tpu.memory_space<vmem>>, vector<16x128xbf16>
      %c0_5 = arith.constant 0 : index
      %c0_6 = arith.constant 0 : index
      %13 = vector.load %arg10[%c0_5, %c0_6] : memref<256x128xbf16, #tpu.memory_space<vmem>>, vector<256x128xbf16>
      %c0_7 = arith.constant 0 : index
      %c0_8 = arith.constant 0 : index
      %14 = vector.load %arg11[%c0_7, %c0_8] : memref<1x128xf32, #tpu.memory_space<vmem>>, vector<1x128xf32>
      %cst = arith.constant dense<0.000000e+00> : vector<16x128xf32>
      %15 = tpu.matmul %3, %12, %cst {dimension_numbers = #tpu.dot_dimension_numbers<[1], [0], [0], [1], [0, 0, 1, 1], [], []>} : vector<16x16xbf16>, vector<16x128xbf16>, vector<16x128xf32> -> vector<16x128xf32>
      %16 = arith.truncf %15 : vector<16x128xf32> to vector<16x128xbf16>
      %17 = tpu.concatenate %11, %16 in 1 : vector<16x128xbf16>, vector<16x128xbf16> -> vector<16x256xbf16>
      %cst_9 = arith.constant dense<0.000000e+00> : vector<16x128xf32>
      %18 = tpu.matmul %17, %13, %cst_9 {dimension_numbers = #tpu.dot_dimension_numbers<[1], [0], [0], [1], [0, 0, 1, 1], [], []>} : vector<16x256xbf16>, vector<256x128xbf16>, vector<16x128xf32> -> vector<16x128xf32>
      %19 = vector.broadcast %14 : vector<1x128xf32> to vector<16x128xf32>
      %20 = arith.addf %18, %19 : vector<16x128xf32>
      %c0_10 = arith.constant 0 : index
      %c0_11 = arith.constant 0 : index
      %21 = vector.load %arg14[%c0_10, %c0_11] : memref<16x128xf32, #tpu.memory_space<vmem>>, vector<16x128xf32>
      tpu.vector_store %arg14[%c0_10, %c0_11], %20 {strides = array<i32>} : memref<16x128xf32, #tpu.memory_space<vmem>>, vector<16x128xf32>,
    } else {
    }
    return
  }
  func.func @transform_0(%arg0: i32, %arg1: i32) -> (i32, i32) {
    %c0_i32 = arith.constant 0 : i32
    %c0_i32_0 = arith.constant 0 : i32
    %c0_i32_1 = arith.constant 0 : i32
    return %c0_i32, %c0_i32_0 : i32, i32
  }
  func.func @transform_1(%arg0: i32, %arg1: i32) -> (i32, i32) {
    %c0_i32 = arith.constant 0 : i32
    %c0_i32_0 = arith.constant 0 : i32
    %c0_i32_1 = arith.constant 0 : i32
    return %c0_i32, %c0_i32_0 : i32, i32
  }
  func.func @transform_2(%arg0: i32, %arg1: i32) -> (i32, i32) {
    %c0_i32 = arith.constant 0 : i32
    %c0_i32_0 = arith.constant 0 : i32
    %c0_i32_1 = arith.constant 0 : i32
    return %c0_i32, %c0_i32_0 : i32, i32
  }
  func.func @transform_3(%arg0: i32, %arg1: i32) -> (i32, i32) {
    %c0_i32 = arith.constant 0 : i32
    %c0_i32_0 = arith.constant 0 : i32
    %c0_i32_1 = arith.constant 0 : i32
    return %c0_i32, %c0_i32_0 : i32, i32
  }
  func.func @transform_4(%arg0: i32, %arg1: i32) -> (i32, i32) {
    %c0_i32 = arith.constant 0 : i32
    %c0_i32_0 = arith.constant 0 : i32
    %c0_i32_1 = arith.constant 0 : i32
    return %c0_i32, %c0_i32_0 : i32, i32
  }
  func.func @transform_5(%arg0: i32, %arg1: i32) -> (i32, i32) {
    %c0_i32 = arith.constant 0 : i32
    %c0_i32_0 = arith.constant 0 : i32
    %c0_i32_1 = arith.constant 0 : i32
    return %c0_i32, %c0_i32_0 : i32, i32
  }
  func.func @transform_6(%arg0: i32, %arg1: i32) -> (i32, i32) {
    %c0_i32 = arith.constant 0 : i32
    %c0_i32_0 = arith.constant 0 : i32
    %c0_i32_1 = arith.constant 0 : i32
    return %c0_i32, %c0_i32_0 : i32, i32
  }
  func.func @transform_7(%arg0: i32, %arg1: i32) -> (i32, i32) {
    %c0_i32 = arith.constant 0 : i32
    %c0_i32_0 = arith.constant 0 : i32
    %c0_i32_1 = arith.constant 0 : i32
    return %c0_i32, %c0_i32_0 : i32, i32
  }
  func.func @transform_8(%arg0: i32, %arg1: i32) -> (i32, i32) {
    %c0_i32 = arith.constant 0 : i32
    %c0_i32_0 = arith.constant 0 : i32
    %c0_i32_1 = arith.constant 0 : i32
    return %c0_i32, %c0_i32_0 : i32, i32
  }
  func.func @transform_9(%arg0: i32, %arg1: i32) -> (i32, i32) {
    %c0_i32 = arith.constant 0 : i32
    %c0_i32_0 = arith.constant 0 : i32
    %c0_i32_1 = arith.constant 0 : i32
    return %c0_i32, %c0_i32_0 : i32, i32
  }
  func.func @transform_10(%arg0: i32, %arg1: i32) -> (i32, i32) {
    %c1_i32 = arith.constant 1 : i32
    %0 = arith.subi %c1_i32, %arg0 : i32
    %1 = arith.muli %arg1, %0 : i32
    %c0_i32 = arith.constant 0 : i32
    %2 = arith.muli %c0_i32, %arg0 : i32
    %3 = arith.addi %1, %2 : i32
    %c0_i32_0 = arith.constant 0 : i32
    %c0_i32_1 = arith.constant 0 : i32
    return %3, %c0_i32_0 : i32, i32
  }
  func.func @transform_11(%arg0: i32, %arg1: i32) -> (i32, i32) {
    %c1_i32 = arith.constant 1 : i32
    %0 = arith.subi %c1_i32, %arg0 : i32
    %1 = arith.muli %arg1, %0 : i32
    %c0_i32 = arith.constant 0 : i32
    %2 = arith.muli %c0_i32, %arg0 : i32
    %3 = arith.addi %1, %2 : i32
    %c0_i32_0 = arith.constant 0 : i32
    %c0_i32_1 = arith.constant 0 : i32
    return %3, %c0_i32_0 : i32, i32
  }
  func.func @transform_12(%arg0: i32, %arg1: i32) -> (i32, i32) {
    %0 = arith.muli %arg1, %arg0 : i32
    %c0_i32 = arith.constant 0 : i32
    %c0_i32_0 = arith.constant 0 : i32
    return %0, %c0_i32 : i32, i32
  }
}

</mosaic_0001>

<bundles_post_ra>
// kernel: cheb_anomaly_detector.1
= control target key start
LH: loop header
LB: loop body
LE: loop exit
PB: predicated region body
PF: predicated region fallthrough
CT: control target
= control target key end

     0   :  { %18 = vsyncpa [#allocation4], 0  ;;  %s2089_s0 = inlined_call_operand.vmem [shape: bf16[16,16], index: 0, kind: input, shape index: {}]   ;;  %s2090_s1 = inlined_call_operand.vmem [shape: bf16[16,128], index: 1, kind: input, shape index: {}]   ;;  %s2091_s2 = inlined_call_operand.vmem [shape: bf16[256,128], index: 2, kind: input, shape index: {}]   ;;  %s2092_s3 = inlined_call_operand.vmem [shape: f32[1,128], index: 3, kind: input, shape index: {}]   ;;  %s2093_s4 = inlined_call_operand.vmem [shape: bf16[128,128], index: 4, kind: input, shape index: {}]   ;;  %s2094_s5 = inlined_call_operand.vmem [shape: f32[1,128], index: 5, kind: input, shape index: {}]   ;;  %s2095_s6 = inlined_call_operand.vmem [shape: bf16[128,128], index: 6, kind: input, shape index: {}]   ;;  %s2096_s7 = inlined_call_operand.vmem [shape: f32[1,128], index: 7, kind: input, shape index: {}]   ;;  %s2097_s8 = inlined_call_operand.vmem [shape: bf16[256,128], index: 8, kind: input, shape index: {}]   ;;  %s2098_s9 = inlined_call_operand.vmem [shape: f32[1,128], index: 9, kind: input, shape index: {}]   ;;  %s2099_s10 = inlined_call_operand.hbm [shape: f32[16,128], index: 10, kind: output, shape index: {0}]   ;;  %s2100_s11 = inlined_call_operand.hbm [shape: f32[16,128], index: 11, kind: output, shape index: {1}]   ;;  %s2101_s12 = inlined_call_operand.vmem [shape: f32[16,128], index: 12, kind: output, shape index: {2}]  }
   0x1   :  { %20 = vsyncpa [#allocation4 + $0x1], 0 }
   0x2   :  { %21 = vsyncpa [#allocation6], 0 }
   0x3   :  { %23 = vsyncpa [#allocation6 + $0x1], 0  ;;  %s1806_s21 = smov 0   ;;  %s1808_s22 = smov 0  }
   0x4   :  { %s1810_s23 = smov 0  }
   0x5 LB: > { %s1357_s24 = sadd.s32 4294967295, %s1731_s23   ;;  %s1358_s25 = sadd.s32 4294967294, %s1731_s23   ;;  %s1731_s23 = sphi %s1810_s23, %s29_s23   ;;  %s1727_s22 = sphi %s1808_s22, %s2104_s22   ;;  %s1723_s21 = sphi %s1806_s21, %s2103_s21  }
   0x6   : > { %s41_s26 = sadd.s32 1, %s1727_s22  ;;  %p1360_p0 = scmp.ge.s32.totalorder %s1731_s23, 1 }
   0x7   : > { %p43_p1 = scmp.ge.s32.totalorder %s41_s26, 2  ;;  %p385_p2 = scmp.lt.s32.totalorder %s1731_s23, 3 }
   0x9   : > { %s2106_s26 = smov (%p43_p1, %s41_s26), 0  ;;  %p386_p3 = pnand %p1360_p0, %p385_p2 }
   0xa   : > { %v1831_v0 = vld [vmem:[%s2089_s0] sm:$0xf] (!%p386_p3)  ;;  %v1836_v1 = vld [vmem:[%s2089_s0 + $0x4] sm:$0xf] (!%p386_p3)  ;;  %p1361_p4 = scmp.ne.s32.totalorder (!%p386_p3), %s1723_s21, 0 }
   0xb   : > { %389 = sbr.rel (%p386_p3) target bundleno = 1388 (0x56c), region = 60 }
  0x12   : > { %458 = sbr.rel (%p1361_p4) target bundleno = 898 (0x382), region = 64  ;;  %v1599_v2 = vld [vmem:[%s2090_s1] sm:$0xff] (!%p1361_p4)   ;;  %v1733_v3 = vmov (!%p1361_p4), 0.0   ;;  %v1362_v4 = vcombine.low (!%p1361_p4), %v1831_v0, %v1836_v1  ;;  %vm1734_vm0 = vmmov (!%p1361_p4), 0   ;;  %vm509_vm1 = vcmask (!%p1361_p4), 130048   ;;  %v1602_v7 = vld [vmem:[%s2091_s2 + $0x48] sm:$0xff] (!%p1361_p4)  }
  0x13   : > { %1495 = vmatprep.subr.bf16.mxu0 (!%p1361_p4), %v1733_v3  ;;  %1497 = vmatprep.mubr.msk.bf16.mxu0 (!%p1361_p4), %vm1734_vm0, %v1733_v3  ;;  %v1600_v5 = vld [vmem:[%s2091_s2 + $0x40] sm:$0xff] (!%p1361_p4)   ;;  %v1603_v8 = vld [vmem:[%s2091_s2 + $0x8] sm:$0xff] (!%p1361_p4)   ;;  %v1604_v9 = vld [vmem:[%s2091_s2 + $0x50] sm:$0xff] (!%p1361_p4)  }
  0x14   : > { %1496 = vmatpush3.bf16.msra.mxu0 (!%p1361_p4), %v1599_v2  ;;  %v1601_v6 = vld [vmem:[%s2091_s2] sm:$0xff] (!%p1361_p4)   ;;  %1431 = vmatprep.subr.bf16.mxu1 (!%p1361_p4), %v1600_v5  ;;  %v1605_v10 = vld [vmem:[%s2091_s2 + $0x10] sm:$0xff] (!%p1361_p4)   ;;  %v1606_v11 = vld [vmem:[%s2091_s2 + $0x58] sm:$0xff] (!%p1361_p4)  }
  0x15   : > { %1501 = vmatprep.subr.bf16.mxu0 (!%p1361_p4), %v1733_v3  ;;  %1432 = vmatpush3.bf16.msra.mxu1 (!%p1361_p4), %v1601_v6  ;;  %v1607_v12 = vld [vmem:[%s2091_s2 + $0x18] sm:$0xff] (!%p1361_p4)   ;;  %v1608_v13 = vld [vmem:[%s2091_s2 + $0x60] sm:$0xff] (!%p1361_p4)   ;;  %v1610_v15 = vld [vmem:[%s2091_s2 + $0x68] sm:$0xff] (!%p1361_p4)  }
  0x16   : > { %1433 = vmatprep.subr.bf16.mxu1 (!%p1361_p4), %v1602_v7  ;;  %v1609_v14 = vld [vmem:[%s2091_s2 + $0x20] sm:$0xff] (!%p1361_p4)   ;;  %v1611_v16 = vld [vmem:[%s2091_s2 + $0x28] sm:$0xff] (!%p1361_p4)   ;;  %v1612_v17 = vld [vmem:[%s2091_s2 + $0x70] sm:$0xff] (!%p1361_p4)  }
  0x17   : > { %1498 = vmatmul.mubr.msk.bf16.vlgmr.msra.gmra.mrb[0].mxu0 (!%p1361_p4), %vm509_vm1, %v1362_v4  ;;  %v1613_v18 = vld [vmem:[%s2091_s2 + $0x30] sm:$0xff] (!%p1361_p4)   ;;  %v1614_v19 = vld [vmem:[%s2091_s2 + $0x78] sm:$0xff] (!%p1361_p4)   ;;  %v1617_v21 = vld [vmem:[%s2093_s4] sm:$0xff] (!%p1361_p4)  }
  0x18   : > { %1517 = vmatprep.mubr.msk.bf16.mxu0 (!%p1361_p4), %vm1734_vm0, %v1733_v3  ;;  %v1615_v20 = vld [vmem:[%s2091_s2 + $0x38] sm:$0xff] (!%p1361_p4)   ;;  %1502 = vmatpush3.bf16.msra.mxu0 (!%p1361_p4), %v1617_v21  ;;  %v1618_v22 = vld [vmem:[%s2093_s4 + $0x8] sm:$0xff] (!%p1361_p4)   ;;  %v1619_v23 = vld [vmem:[%s2093_s4 + $0x10] sm:$0xff] (!%p1361_p4)  }
  0x19   : > { %1434 = vmatpush3.bf16.msra.mxu1 %v1603_v8  ;;  %1503 = vmatprep.subr.bf16.mxu0 %v1733_v3  ;;  %v1620_v24 = vld [vmem:[%s2093_s4 + $0x18] sm:$0xff]   ;;  %v1621_v25 = vld [vmem:[%s2093_s4 + $0x20] sm:$0xff]   ;;  %v1622_v26 = vld [vmem:[%s2093_s4 + $0x28] sm:$0xff]  }
  0x1a   : > { %1435 = vmatprep.subr.bf16.mxu1 %v1604_v9  ;;  %v1616_v30 = vld [vmem:[%s2090_s1] sm:$0xff]   ;;  %v1623_v33 = vld [vmem:[%s2093_s4 + $0x30] sm:$0xff]   ;;  %v1624_v34 = vld [vmem:[%s2093_s4 + $0x38] sm:$0xff]  }
  0x1b   : > { %v1625_v35 = vld [vmem:[%s2095_s6] sm:$0xff]   ;;  %v1626_v36 = vld [vmem:[%s2095_s6 + $0x8] sm:$0xff]   ;;  %v1627_v37 = vld [vmem:[%s2095_s6 + $0x10] sm:$0xff]  }
  0x1c   : > { %1504 = vmatpush3.bf16.msra.mxu0 %v1618_v22  ;;  %v1628_v38 = vld [vmem:[%s2095_s6 + $0x18] sm:$0xff]   ;;  %v1629_v39 = vld [vmem:[%s2095_s6 + $0x20] sm:$0xff]   ;;  %v1630_v40 = vld [vmem:[%s2095_s6 + $0x28] sm:$0xff]  }
  0x1d   : > { %1436 = vmatpush3.bf16.msra.mxu1 %v1605_v10  ;;  %1505 = vmatprep.subr.bf16.mxu0 %v1733_v3  ;;  %v1366_v42 = vld [vmem:[%s2092_s3] ss:$0 sm:$0xff]  ;;  %v1631_v54 = vld [vmem:[%s2095_s6 + $0x30] sm:$0xff]   ;;  %v1632_v55 = vld [vmem:[%s2095_s6 + $0x38] sm:$0xff]  }
  0x1e   : > { %1437 = vmatprep.subr.bf16.mxu1 %v1606_v11  ;;  %v1383_v56 = vld [vmem:[%s2094_s5] ss:$0 sm:$0xff] }
  0x20   : > { %1506 = vmatpush3.bf16.msra.mxu0 %v1619_v23 }
  0x21   : > { %1438 = vmatpush3.bf16.msra.mxu1 %v1607_v12  ;;  %1507 = vmatprep.subr.bf16.mxu0 %v1733_v3 }
  0x22   : > { %1439 = vmatprep.subr.bf16.mxu1 %v1608_v13 }
  0x24   : > { %1508 = vmatpush3.bf16.msra.mxu0 %v1620_v24 }
  0x25   : > { %1440 = vmatpush3.bf16.msra.mxu1 %v1609_v14  ;;  %1509 = vmatprep.subr.bf16.mxu0 %v1733_v3 }
  0x26   : > { %1441 = vmatprep.subr.bf16.mxu1 %v1610_v15 }
  0x28   : > { %1510 = vmatpush3.bf16.msra.mxu0 %v1621_v25 }
  0x29   : > { %1442 = vmatpush3.bf16.msra.mxu1 %v1611_v16  ;;  %1511 = vmatprep.subr.bf16.mxu0 %v1733_v3 }
  0x2a   : > { %1443 = vmatprep.subr.bf16.mxu1 %v1612_v17 }
  0x2c   : > { %1512 = vmatpush3.bf16.msra.mxu0 %v1622_v26 }
  0x2d   : > { %1444 = vmatpush3.bf16.msra.mxu1 %v1613_v18  ;;  %1513 = vmatprep.subr.bf16.mxu0 %v1733_v3 }
  0x2e   : > { %1445 = vmatprep.subr.bf16.mxu1 %v1614_v19 }
  0x30   : > { %1514 = vmatpush3.bf16.msra.mxu0 %v1623_v33 }
  0x31   : > { %1446 = vmatpush3.bf16.msra.mxu1 %v1615_v20  ;;  %1515 = vmatprep.subr.bf16.mxu0 %v1733_v3 }
  0x32   : > { %1521 = vmatprep.subr.bf16.mxu1 %v1733_v3 }
  0x34   : > { %1516 = vmatpush3.bf16.msra.mxu0 %v1624_v34 }
  0xea   : > { %v547_v27 = vpop.f32.mrb[0].mxu0 }
  0xeb   : > { %v1499_v28 = vpop.f32.mrb[1].mxu0 }
  0xec   : > { %v550_v29 = vpop.f32.mrb[2].mxu0 }
  0xed   : > { %v1500_v31 = vpop.f32.mrb[3].mxu0  ;;  %v554_v32 = vpack.c.bf16 %v550_v29, %v547_v27 }
  0xef   : > { %695 = vmatprep.mubr.bf16.mxu1 %v554_v32 }
  0xf0   : > { %696 = vmatmul.mubr.bf16.vlgmr.msra.gmra.mrb[0].mxu1 %v1616_v30 }
  0xf1   : > { %1537 = vmatprep.mubr.msk.bf16.mxu1 %vm1734_vm0, %v1733_v3  ;;  %1522 = vmatpush3.bf16.msra.mxu1 %v1625_v35 }
  0xf2   : > { %1523 = vmatprep.subr.bf16.mxu1 %v1733_v3 }
  0xf5   : > { %1524 = vmatpush3.bf16.msra.mxu1 %v1626_v36 }
  0xf6   : > { %1525 = vmatprep.subr.bf16.mxu1 %v1733_v3 }
  0xf9   : > { %1526 = vmatpush3.bf16.msra.mxu1 %v1627_v37 }
  0xfa   : > { %1527 = vmatprep.subr.bf16.mxu1 %v1733_v3 }
  0xfd   : > { %1528 = vmatpush3.bf16.msra.mxu1 %v1628_v38 }
  0xfe   : > { %1529 = vmatprep.subr.bf16.mxu1 %v1733_v3 }
 0x101   : > { %1530 = vmatpush3.bf16.msra.mxu1 %v1629_v39 }
 0x102   : > { %1531 = vmatprep.subr.bf16.mxu1 %v1733_v3 }
 0x105   : > { %1532 = vmatpush3.bf16.msra.mxu1 %v1630_v40 }
 0x106   : > { %1533 = vmatprep.subr.bf16.mxu1 %v1733_v3 }
 0x109   : > { %1534 = vmatpush3.bf16.msra.mxu1 %v1631_v54 }
 0x10a   : > { %1535 = vmatprep.subr.bf16.mxu1 %v1733_v3  ;;  %v1392_v3 = vld [vmem:[%s2096_s7] ss:$0 sm:$0xff] }
 0x10d   : > { %1536 = vmatpush3.bf16.msra.mxu1 %v1632_v55 }
 0x1c3   : > { %v1447_v41 = vpop.f32.mrb[0].mxu1 }
 0x1c4   : > { %v1448_v43 = vpop.f32.mrb[1].mxu1 }
 0x1c5   : > { %v1449_v44 = vadd.f32 %v1448_v43, %v1447_v41  ;;  %v1450_v45 = vpop.f32.mrb[2].mxu1 }
 0x1c6   : > { %v1451_v46 = vpop.f32.mrb[3].mxu1 }
 0x1c7   : > { %v698_v47 = vadd.f32 %v1449_v44, %v1366_v42  ;;  %v1452_v48 = vadd.f32 %v1451_v46, %v1450_v45 }
 0x1c9   : > { %704 = vst [vmem:[#allocation3] sm:$0xff] %v698_v47  ;;  %v701_v49 = vadd.f32 %v1452_v48, %v1366_v42  ;;  %v706_v50 = vmax.f32 %v698_v47, 0.0 }
 0x1cb   : > { %705 = vst [vmem:[#allocation3 + $0x8] sm:$0xff] %v701_v49  ;;  %v707_v51 = vmax.f32 %v701_v49, 0.0  ;;  %v748_v52 = vpack.c.bf16 %v701_v49, %v698_v47 }
 0x1cd   : > { %v708_v53 = vpack.c.bf16 %v707_v51, %v706_v50  ;;  %1518 = vmatmul.mubr.bf16.vlgmr.msra.gmra.mrb[4].mxu0 %v748_v52 }
 0x1cf   : > { %713 = vst [vmem:[#allocation2] sm:$0xff] %v708_v53 }
 0x2a0   : > { %v837_v57 = vpop.f32.mrb[4].mxu0 }
 0x2a1   : > { %v838_v58 = vadd.f32 %v1383_v56, %v837_v57  ;;  %v1519_v59 = vpop.f32.mrb[5].mxu0 }
 0x2a2   : > { %v840_v60 = vpop.f32.mrb[6].mxu0 }
 0x2a3   : > { %v841_v61 = vadd.f32 %v1383_v56, %v840_v60  ;;  %v1520_v62 = vpop.f32.mrb[7].mxu0  ;;  %v844_v63 = vmax.f32 %v838_v58, 0.0 }
 0x2a5   : > { %v845_v2 = vmax.f32 %v841_v61, 0.0 }
 0x2a7   : > { %v846_v4 = vpack.c.bf16 %v845_v2, %v844_v63 }
 0x2a9   : > { %1538 = vmatmul.mubr.bf16.vlgmr.msra.gmra.mrb[4].mxu1 %v846_v4 }
 0x37c   : > { %v935_v5 = vpop.f32.mrb[4].mxu1 }
 0x37d   : > { %v936_v6 = vadd.f32 %v1392_v3, %v935_v5  ;;  %v1539_v7 = vpop.f32.mrb[5].mxu1 }
 0x37e   : > { %v938_v8 = vpop.f32.mrb[6].mxu1 }
 0x37f   : > { %942 = vst [vmem:[#allocation5] sm:$0xff] %v936_v6  ;;  %v939_v9 = vadd.f32 %v1392_v3, %v938_v8  ;;  %v1540_v10 = vpop.f32.mrb[7].mxu1 }
 0x381   : > { %943 = vst [vmem:[#allocation5 + $0x8] sm:$0xff] %v939_v9 }
 0x382 PF: > { %p1401_p5 = scmp.ne.s32.totalorder %s1723_s21, 1 }
 0x383   : > { %v953_v11 = vld [vmem:[#allocation2] sm:$0xff] (!%p1401_p5)  ;;  %v1735_v12 = vmov (!%p1401_p5), 0.0   ;;  %vm1736_vm2 = vmmov (!%p1401_p5), 0   ;;  %v1402_v13 = vcombine.low (!%p1401_p5), %v1831_v0, %v1836_v1  ;;  %vm992_vm3 = vcmask (!%p1401_p5), 130048   ;;  %v1635_v16 = vld [vmem:[%s2097_s8 + $0x48] sm:$0xff] (!%p1401_p5)   ;;  %v1637_v1 = vld [vmem:[%s2097_s8 + $0x50] sm:$0xff] (!%p1401_p5)  }
 0x384   : > { %947 = sbr.rel (%p1401_p5) target bundleno = 1341 (0x53d), region = 68  ;;  %1541 = vmatprep.subr.bf16.mxu0 (!%p1401_p5), %v1735_v12  ;;  %1543 = vmatprep.mubr.msk.bf16.mxu0 (!%p1401_p5), %vm1736_vm2, %v1735_v12  ;;  %v1633_v14 = vld [vmem:[%s2097_s8 + $0x40] sm:$0xff] (!%p1401_p5)   ;;  %v1636_v0 = vld [vmem:[%s2097_s8 + $0x8] sm:$0xff] (!%p1401_p5)   ;;  %v1638_v17 = vld [vmem:[%s2097_s8 + $0x10] sm:$0xff] (!%p1401_p5)  }
 0x385   : > { %1542 = vmatpush3.bf16.msra.mxu0 (!%p1401_p5), %v953_v11  ;;  %v1634_v15 = vld [vmem:[%s2097_s8] sm:$0xff] (!%p1401_p5)   ;;  %1473 = vmatprep.subr.bf16.mxu1 (!%p1401_p5), %v1633_v14  ;;  %v1639_v18 = vld [vmem:[%s2097_s8 + $0x58] sm:$0xff] (!%p1401_p5)   ;;  %v1643_v22 = vld [vmem:[%s2097_s8 + $0x68] sm:$0xff] (!%p1401_p5)  }
 0x386   : > { %1474 = vmatpush3.bf16.msra.mxu1 (!%p1401_p5), %v1634_v15  ;;  %v1640_v19 = vld [vmem:[%s2097_s8 + $0x18] sm:$0xff] (!%p1401_p5)   ;;  %v1641_v20 = vld [vmem:[%s2097_s8 + $0x60] sm:$0xff] (!%p1401_p5)   ;;  %v1644_v23 = vld [vmem:[%s2097_s8 + $0x28] sm:$0xff] (!%p1401_p5)  }
 0x387   : > { %1475 = vmatprep.subr.bf16.mxu1 (!%p1401_p5), %v1635_v16  ;;  %v1642_v21 = vld [vmem:[%s2097_s8 + $0x20] sm:$0xff] (!%p1401_p5)   ;;  %v1645_v24 = vld [vmem:[%s2097_s8 + $0x70] sm:$0xff] (!%p1401_p5)   ;;  %v1647_v26 = vld [vmem:[%s2097_s8 + $0x78] sm:$0xff] (!%p1401_p5)  }
 0x388   : > { %1544 = vmatmul.mubr.msk.bf16.vlgmr.msra.gmra.mrb[0].mxu0 (!%p1401_p5), %vm992_vm3, %v1402_v13  ;;  %v1646_v25 = vld [vmem:[%s2097_s8 + $0x30] sm:$0xff] (!%p1401_p5)   ;;  %v1648_v27 = vld [vmem:[%s2097_s8 + $0x38] sm:$0xff] (!%p1401_p5)   ;;  %v1404_v34 = vld [vmem:[%s2098_s9] ss:$0 sm:$0xff] (!%p1401_p5) }
 0x38a   : > { %1476 = vmatpush3.bf16.msra.mxu1 (!%p1401_p5), %v1636_v0 }
 0x38b   : > { %1477 = vmatprep.subr.bf16.mxu1 %v1637_v1 }
 0x38e   : > { %1478 = vmatpush3.bf16.msra.mxu1 %v1638_v17 }
 0x38f   : > { %1479 = vmatprep.subr.bf16.mxu1 %v1639_v18 }
 0x392   : > { %1480 = vmatpush3.bf16.msra.mxu1 %v1640_v19 }
 0x393   : > { %1481 = vmatprep.subr.bf16.mxu1 %v1641_v20 }
 0x396   : > { %1482 = vmatpush3.bf16.msra.mxu1 %v1642_v21 }
 0x397   : > { %1483 = vmatprep.subr.bf16.mxu1 %v1643_v22 }
 0x39a   : > { %1484 = vmatpush3.bf16.msra.mxu1 %v1644_v23 }
 0x39b   : > { %1485 = vmatprep.subr.bf16.mxu1 %v1645_v24 }
 0x39e   : > { %1486 = vmatpush3.bf16.msra.mxu1 %v1646_v25 }
 0x39f   : > { %1487 = vmatprep.subr.bf16.mxu1 %v1647_v26 }
 0x3a2   : > { %1488 = vmatpush3.bf16.msra.mxu1 %v1648_v27 }
 0x45b   : > { %v1030_v28 = vpop.f32.mrb[0].mxu0 }
 0x45c   : > { %v1545_v29 = vpop.f32.mrb[1].mxu0 }
 0x45d   : > { %v1033_v30 = vpop.f32.mrb[2].mxu0 }
 0x45e   : > { %v1546_v31 = vpop.f32.mrb[3].mxu0  ;;  %v1037_v32 = vpack.c.bf16 %v1033_v30, %v1030_v28 }
 0x460   : > { %1172 = vmatprep.mubr.bf16.mxu1 %v1037_v32 }
 0x461   : > { %1173 = vmatmul.mubr.bf16.vlgmr.msra.gmra.mrb[0].mxu1 %v953_v11 }
 0x534   : > { %v1489_v33 = vpop.f32.mrb[0].mxu1 }
 0x535   : > { %v1490_v35 = vpop.f32.mrb[1].mxu1 }
 0x536   : > { %v1491_v36 = vadd.f32 %v1490_v35, %v1489_v33  ;;  %v1492_v37 = vpop.f32.mrb[2].mxu1 }
 0x537   : > { %v1493_v38 = vpop.f32.mrb[3].mxu1 }
 0x538   : > { %v1175_v39 = vadd.f32 %v1491_v36, %v1404_v34  ;;  %v1494_v40 = vadd.f32 %v1493_v38, %v1492_v37 }
 0x53a   : > { %1181 = vst [vmem:[%s2101_s12] sm:$0xff] %v1175_v39  ;;  %v1178_v41 = vadd.f32 %v1494_v40, %v1404_v34 }
 0x53c   : > { %1182 = vst [vmem:[%s2101_s12 + $0x8] sm:$0xff] %v1178_v41 }
 0x53d PF: > { %p2037_p6 = scmp.eq.s32.totalorder %s1357_s24, 1  ;;  %s1737_s15 = smov [#allocation3]  }
 0x53e   : > { %s1210_s16 = sshll.u32 %s1737_s15, 4  ;;  %s1211_s16 = int_to_ptr.vmem [resolvable:$true] %s1210_s16 }
 0x53f   : > { %s1649_s17 = scalar_lea.vmem %s1211_s16, 256  ;;  %s1655_s18 = scalar_lea.vmem %s1211_s16, 512 }
 0x540   : > { %p1650_p7 = scmp.ne.s32.totalorder %s1211_s16, %s1649_s17  ;;  %p1656_p10 = scmp.lt.s32.totalorder %s1211_s16, %s1211_s16 }
 0x541   : > { %p1657_p11 = scmp.lt.s32.totalorder %s1655_s18, %s1649_s17 }
 0x542   : > { %p1651_p8 = pnand %p1650_p7, %p2037_p6 }
 0x543   : > { %p1658_p12 = por %p1657_p11, %p1656_p10 }
 0x544   : > { %p1652_p9 = pneg %p1651_p8 }
 0x546   : > { %p1659_p13 = pnand %p1658_p12, %p1652_p9 }
 0x548   : > { %1662 = shalt.err (!%p1659_p13)
}
 0x549   : > { %s1663_s19 = scalar_lea.hbm %s2099_s10, 256 }
 0x54a   : > { %p1664_p0 = scmp.ne.s32.totalorder %s2099_s10, %s1663_s19  ;;  %p1669_p3 = scmp.lt.u32.totalorder %s1663_s19, %s2099_s10 }
 0x54c   : > { %p1665_p1 = pnand %p1664_p0, %p2037_p6 }
 0x54e   : > { %p1666_p2 = pneg %p1665_p1 }
 0x550   : > { %p1671_p4 = pnand %p1669_p3, %p1666_p2 }
 0x552   : > { %1674 = shalt.err (!%p1671_p4)
}
 0x553   : > { %s1738_s30 = smov 128   ;;  %s1739_s13 = smov 8  }
 0x554   : > { %1548 = dma.vmem_to_hbm [thread:$0]  (%p2037_p6), %s1211_s16, 256, %s2099_s10, [#allocation4], %s1738_s30, %s1738_s30, %s1739_s13  }
 0x555   : > { %s1740_s18 = smov [#allocation5]  }
 0x556   : > { %s1228_s21 = sshll.u32 %s1740_s18, 4  ;;  %s1229_s21 = int_to_ptr.vmem [resolvable:$true] %s1228_s21 }
 0x557   : > { %s1675_s24 = scalar_lea.vmem %s1229_s21, 256  ;;  %s1681_s19 = scalar_lea.vmem %s1229_s21, 512 }
 0x558   : > { %p1676_p5 = scmp.ne.s32.totalorder %s1229_s21, %s1675_s24  ;;  %p1682_p9 = scmp.lt.s32.totalorder %s1229_s21, %s1229_s21 }
 0x559   : > { %p1683_p10 = scmp.lt.s32.totalorder %s1681_s19, %s1675_s24 }
 0x55a   : > { %p1677_p7 = pnand %p1676_p5, %p2037_p6 }
 0x55b   : > { %p1684_p11 = por %p1683_p10, %p1682_p9 }
 0x55c   : > { %p1678_p8 = pneg %p1677_p7 }
 0x55e   : > { %p1685_p12 = pnand %p1684_p11, %p1678_p8 }
 0x560   : > { %1688 = shalt.err (!%p1685_p12)
}
 0x561   : > { %s1689_s28 = scalar_lea.hbm %s2100_s11, 256 }
 0x562   : > { %p1690_p13 = scmp.ne.s32.totalorder %s2100_s11, %s1689_s28  ;;  %p1695_p2 = scmp.lt.u32.totalorder %s1689_s28, %s2100_s11 }
 0x564   : > { %p1691_p0 = pnand %p1690_p13, %p2037_p6 }
 0x566   : > { %p1692_p1 = pneg %p1691_p0 }
 0x568   : > { %p1697_p3 = pnand %p1695_p2, %p1692_p1 }
 0x56a   : > { %1700 = shalt.err (!%p1697_p3)
}
 0x56b   : > { %1550 = dma.vmem_to_hbm [thread:$0]  (%p2037_p6), %s1229_s21, 256, %s2100_s11, [#allocation6], %s1738_s30, %s1738_s30, %s1739_s13  }
 0x56c PF: > { %p1564_p4 = scmp.ge.s32.totalorder %s1731_s23, 2  ;;  %p1565_p5 = scmp.eq.s32.totalorder %s1358_s25, 1 }
 0x56e   : > { %p1556_p7 = pnand %p1565_p5, %p1564_p4 }
 0x570   : > { %1714 = dma.done.wait (!%p1556_p7), [#allocation4], 256  }
 0x571   : > { %1716 = vsyncadd (!%p1556_p7), [#allocation4], 4294967040 }
 0x572   : > { %1718 = dma.done.wait (!%p1556_p7), [#allocation6], 256  }
 0x573   : > { %1720 = vsyncadd (!%p1556_p7), [#allocation6], 4294967040  ;;  %s29_s23 = sadd.s32 1, %s1731_s23   ;;  %s2103_s21 = smov %s1727_s22 }
 0x574   : > { %p26_p8 = scmp.ge.s32.totalorder %s29_s23, 4   ;;  %s2104_s22 = smov %s2106_s26 }
 0x576   :  { %28 = sbr.rel (!%p26_p8) target bundleno = 5 (0x5), region = 133 }
 0x57d   :  { %1272 = vsyncpa [#allocation4], 1 }
 0x57e   :  { %1274 = vsyncpa [#allocation4 + $0x1], 1 }
 0x57f   :  { %1275 = vsyncpa [#allocation6], 1 }
 0x580   :  { %1277 = vsyncpa [#allocation6 + $0x1], 1 }

// kernel: cheb_anomaly_detector.1
= control target key start
LH: loop header
LB: loop body
LE: loop exit
PB: predicated region body
PF: predicated region fallthrough
CT: control target
= control target key end

     0   :  { %18 = vsyncpa [#allocation4], 0  ;;  %s2089_s0 = inlined_call_operand.vmem [shape: bf16[16,16], index: 0, kind: input, shape index: {}]   ;;  %s2090_s1 = inlined_call_operand.vmem [shape: bf16[16,128], index: 1, kind: input, shape index: {}]   ;;  %s2091_s2 = inlined_call_operand.vmem [shape: bf16[256,128], index: 2, kind: input, shape index: {}]   ;;  %s2092_s3 = inlined_call_operand.vmem [shape: f32[1,128], index: 3, kind: input, shape index: {}]   ;;  %s2093_s4 = inlined_call_operand.vmem [shape: bf16[128,128], index: 4, kind: input, shape index: {}]   ;;  %s2094_s5 = inlined_call_operand.vmem [shape: f32[1,128], index: 5, kind: input, shape index: {}]   ;;  %s2095_s6 = inlined_call_operand.vmem [shape: bf16[128,128], index: 6, kind: input, shape index: {}]   ;;  %s2096_s7 = inlined_call_operand.vmem [shape: f32[1,128], index: 7, kind: input, shape index: {}]   ;;  %s2097_s8 = inlined_call_operand.vmem [shape: bf16[256,128], index: 8, kind: input, shape index: {}]   ;;  %s2098_s9 = inlined_call_operand.vmem [shape: f32[1,128], index: 9, kind: input, shape index: {}]   ;;  %s2099_s10 = inlined_call_operand.hbm [shape: f32[16,128], index: 10, kind: output, shape index: {0}]   ;;  %s2100_s11 = inlined_call_operand.hbm [shape: f32[16,128], index: 11, kind: output, shape index: {1}]   ;;  %s2101_s12 = inlined_call_operand.vmem [shape: f32[16,128], index: 12, kind: output, shape index: {2}]  }
   0x1   :  { %20 = vsyncpa [#allocation4 + $0x1], 0 }
   0x2   :  { %21 = vsyncpa [#allocation6], 0 }
   0x3   :  { %23 = vsyncpa [#allocation6 + $0x1], 0  ;;  %s1806_s21 = smov 0   ;;  %s1808_s22 = smov 0  }
   0x4   :  { %s1810_s23 = smov 0  }
   0x5 LB: > { %s1357_s24 = sadd.s32 4294967295, %s1731_s23   ;;  %s1358_s25 = sadd.s32 4294967294, %s1731_s23   ;;  %s1731_s23 = sphi %s1810_s23, %s29_s23   ;;  %s1727_s22 = sphi %s1808_s22, %s2104_s22   ;;  %s1723_s21 = sphi %s1806_s21, %s2103_s21  }
   0x6   : > { %s41_s26 = sadd.s32 1, %s1727_s22  ;;  %p1360_p0 = scmp.ge.s32.totalorder %s1731_s23, 1 }
   0x7   : > { %p43_p1 = scmp.ge.s32.totalorder %s41_s26, 2  ;;  %p385_p2 = scmp.lt.s32.totalorder %s1731_s23, 3 }
   0x9   : > { %s2106_s26 = smov (%p43_p1, %s41_s26), 0  ;;  %p386_p3 = pnand %p1360_p0, %p385_p2 }
   0xa   : > { %v1831_v0 = vld [vmem:[%s2089_s0] sm:$0xf] (!%p386_p3)  ;;  %v1836_v1 = vld [vmem:[%s2089_s0 + $0x4] sm:$0xf] (!%p386_p3)  ;;  %p1361_p4 = scmp.ne.s32.totalorder (!%p386_p3), %s1723_s21, 0 }
   0xb   : > { %389 = sbr.rel (%p386_p3) target bundleno = 1388 (0x56c), region = 60 }
  0x12   : > { %458 = sbr.rel (%p1361_p4) target bundleno = 898 (0x382), region = 64  ;;  %v1599_v2 = vld [vmem:[%s2090_s1] sm:$0xff] (!%p1361_p4)   ;;  %v1733_v3 = vmov (!%p1361_p4), 0.0   ;;  %v1362_v4 = vcombine.low (!%p1361_p4), %v1831_v0, %v1836_v1  ;;  %vm1734_vm0 = vmmov (!%p1361_p4), 0   ;;  %vm509_vm1 = vcmask (!%p1361_p4), 130048   ;;  %v1602_v7 = vld [vmem:[%s2091_s2 + $0x48] sm:$0xff] (!%p1361_p4)  }
  0x13   : > { %1495 = vmatprep.subr.bf16.mxu0 (!%p1361_p4), %v1733_v3  ;;  %1497 = vmatprep.mubr.msk.bf16.mxu0 (!%p1361_p4), %vm1734_vm0, %v1733_v3  ;;  %v1600_v5 = vld [vmem:[%s2091_s2 + $0x40] sm:$0xff] (!%p1361_p4)   ;;  %v1603_v8 = vld [vmem:[%s2091_s2 + $0x8] sm:$0xff] (!%p1361_p4)   ;;  %v1604_v9 = vld [vmem:[%s2091_s2 + $0x50] sm:$0xff] (!%p1361_p4)  }
  0x14   : > { %1496 = vmatpush3.bf16.msra.mxu0 (!%p1361_p4), %v1599_v2  ;;  %v1601_v6 = vld [vmem:[%s2091_s2] sm:$0xff] (!%p1361_p4)   ;;  %1431 = vmatprep.subr.bf16.mxu1 (!%p1361_p4), %v1600_v5  ;;  %v1605_v10 = vld [vmem:[%s2091_s2 + $0x10] sm:$0xff] (!%p1361_p4)   ;;  %v1606_v11 = vld [vmem:[%s2091_s2 + $0x58] sm:$0xff] (!%p1361_p4)  }
  0x15   : > { %1501 = vmatprep.subr.bf16.mxu0 (!%p1361_p4), %v1733_v3  ;;  %1432 = vmatpush3.bf16.msra.mxu1 (!%p1361_p4), %v1601_v6  ;;  %v1607_v12 = vld [vmem:[%s2091_s2 + $0x18] sm:$0xff] (!%p1361_p4)   ;;  %v1608_v13 = vld [vmem:[%s2091_s2 + $0x60] sm:$0xff] (!%p1361_p4)   ;;  %v1610_v15 = vld [vmem:[%s2091_s2 + $0x68] sm:$0xff] (!%p1361_p4)  }
  0x16   : > { %1433 = vmatprep.subr.bf16.mxu1 (!%p1361_p4), %v1602_v7  ;;  %v1609_v14 = vld [vmem:[%s2091_s2 + $0x20] sm:$0xff] (!%p1361_p4)   ;;  %v1611_v16 = vld [vmem:[%s2091_s2 + $0x28] sm:$0xff] (!%p1361_p4)   ;;  %v1612_v17 = vld [vmem:[%s2091_s2 + $0x70] sm:$0xff] (!%p1361_p4)  }
  0x17   : > { %1498 = vmatmul.mubr.msk.bf16.vlgmr.msra.gmra.mrb[0].mxu0 (!%p1361_p4), %vm509_vm1, %v1362_v4  ;;  %v1613_v18 = vld [vmem:[%s2091_s2 + $0x30] sm:$0xff] (!%p1361_p4)   ;;  %v1614_v19 = vld [vmem:[%s2091_s2 + $0x78] sm:$0xff] (!%p1361_p4)   ;;  %v1617_v21 = vld [vmem:[%s2093_s4] sm:$0xff] (!%p1361_p4)  }
  0x18   : > { %1517 = vmatprep.mubr.msk.bf16.mxu0 (!%p1361_p4), %vm1734_vm0, %v1733_v3  ;;  %v1615_v20 = vld [vmem:[%s2091_s2 + $0x38] sm:$0xff] (!%p1361_p4)   ;;  %1502 = vmatpush3.bf16.msra.mxu0 (!%p1361_p4), %v1617_v21  ;;  %v1618_v22 = vld [vmem:[%s2093_s4 + $0x8] sm:$0xff] (!%p1361_p4)   ;;  %v1619_v23 = vld [vmem:[%s2093_s4 + $0x10] sm:$0xff] (!%p1361_p4)  }
  0x19   : > { %1434 = vmatpush3.bf16.msra.mxu1 %v1603_v8  ;;  %1503 = vmatprep.subr.bf16.mxu0 %v1733_v3  ;;  %v1620_v24 = vld [vmem:[%s2093_s4 + $0x18] sm:$0xff]   ;;  %v1621_v25 = vld [vmem:[%s2093_s4 + $0x20] sm:$0xff]   ;;  %v1622_v26 = vld [vmem:[%s2093_s4 + $0x28] sm:$0xff]  }
  0x1a   : > { %1435 = vmatprep.subr.bf16.mxu1 %v1604_v9  ;;  %v1616_v30 = vld [vmem:[%s2090_s1] sm:$0xff]   ;;  %v1623_v33 = vld [vmem:[%s2093_s4 + $0x30] sm:$0xff]   ;;  %v1624_v34 = vld [vmem:[%s2093_s4 + $0x38] sm:$0xff]  }
  0x1b   : > { %v1625_v35 = vld [vmem:[%s2095_s6] sm:$0xff]   ;;  %v1626_v36 = vld [vmem:[%s2095_s6 + $0x8] sm:$0xff]   ;;  %v1627_v37 = vld [vmem:[%s2095_s6 + $0x10] sm:$0xff]  }
  0x1c   : > { %1504 = vmatpush3.bf16.msra.mxu0 %v1618_v22  ;;  %v1628_v38 = vld [vmem:[%s2095_s6 + $0x18] sm:$0xff]   ;;  %v1629_v39 = vld [vmem:[%s2095_s6 + $0x20] sm:$0xff]   ;;  %v1630_v40 = vld [vmem:[%s2095_s6 + $0x28] sm:$0xff]  }
  0x1d   : > { %1436 = vmatpush3.bf16.msra.mxu1 %v1605_v10  ;;  %1505 = vmatprep.subr.bf16.mxu0 %v1733_v3  ;;  %v1366_v42 = vld [vmem:[%s2092_s3] ss:$0 sm:$0xff]  ;;  %v1631_v54 = vld [vmem:[%s2095_s6 + $0x30] sm:$0xff]   ;;  %v1632_v55 = vld [vmem:[%s2095_s6 + $0x38] sm:$0xff]  }
  0x1e   : > { %1437 = vmatprep.subr.bf16.mxu1 %v1606_v11  ;;  %v1383_v56 = vld [vmem:[%s2094_s5] ss:$0 sm:$0xff] }
  0x20   : > { %1506 = vmatpush3.bf16.msra.mxu0 %v1619_v23 }
  0x21   : > { %1438 = vmatpush3.bf16.msra.mxu1 %v1607_v12  ;;  %1507 = vmatprep.subr.bf16.mxu0 %v1733_v3 }
  0x22   : > { %1439 = vmatprep.subr.bf16.mxu1 %v1608_v13 }
  0x24   : > { %1508 = vmatpush3.bf16.msra.mxu0 %v1620_v24 }
  0x25   : > { %1440 = vmatpush3.bf16.msra.mxu1 %v1609_v14  ;;  %1509 = vmatprep.subr.bf16.mxu0 %v1733_v3 }
  0x26   : > { %1441 = vmatprep.subr.bf16.mxu1 %v1610_v15 }
  0x28   : > { %1510 = vmatpush3.bf16.msra.mxu0 %v1621_v25 }
  0x29   : > { %1442 = vmatpush3.bf16.msra.mxu1 %v1611_v16  ;;  %1511 = vmatprep.subr.bf16.mxu0 %v1733_v3 }
  0x2a   : > { %1443 = vmatprep.subr.bf16.mxu1 %v1612_v17 }
  0x2c   : > { %1512 = vmatpush3.bf16.msra.mxu0 %v1622_v26 }
  0x2d   : > { %1444 = vmatpush3.bf16.msra.mxu1 %v1613_v18  ;;  %1513 = vmatprep.subr.bf16.mxu0 %v1733_v3 }
  0x2e   : > { %1445 = vmatprep.subr.bf16.mxu1 %v1614_v19 }
  0x30   : > { %1514 = vmatpush3.bf16.msra.mxu0 %v1623_v33 }
  0x31   : > { %1446 = vmatpush3.bf16.msra.mxu1 %v1615_v20  ;;  %1515 = vmatprep.subr.bf16.mxu0 %v1733_v3 }
  0x32   : > { %1521 = vmatprep.subr.bf16.mxu1 %v1733_v3 }
  0x34   : > { %1516 = vmatpush3.bf16.msra.mxu0 %v1624_v34 }
  0xea   : > { %v547_v27 = vpop.f32.mrb[0].mxu0 }
  0xeb   : > { %v1499_v28 = vpop.f32.mrb[1].mxu0 }
  0xec   : > { %v550_v29 = vpop.f32.mrb[2].mxu0 }
  0xed   : > { %v1500_v31 = vpop.f32.mrb[3].mxu0  ;;  %v554_v32 = vpack.c.bf16 %v550_v29, %v547_v27 }
  0xef   : > { %695 = vmatprep.mubr.bf16.mxu1 %v554_v32 }
  0xf0   : > { %696 = vmatmul.mubr.bf16.vlgmr.msra.gmra.mrb[0].mxu1 %v1616_v30 }
  0xf1   : > { %1537 = vmatprep.mubr.msk.bf16.mxu1 %vm1734_vm0, %v1733_v3  ;;  %1522 = vmatpush3.bf16.msra.mxu1 %v1625_v35 }
  0xf2   : > { %1523 = vmatprep.subr.bf16.mxu1 %v1733_v3 }
  0xf5   : > { %1524 = vmatpush3.bf16.msra.mxu1 %v1626_v36 }
  0xf6   : > { %1525 = vmatprep.subr.bf16.mxu1 %v1733_v3 }
  0xf9   : > { %1526 = vmatpush3.bf16.msra.mxu1 %v1627_v37 }
  0xfa   : > { %1527 = vmatprep.subr.bf16.mxu1 %v1733_v3 }
  0xfd   : > { %1528 = vmatpush3.bf16.msra.mxu1 %v1628_v38 }
  0xfe   : > { %1529 = vmatprep.subr.bf16.mxu1 %v1733_v3 }
 0x101   : > { %1530 = vmatpush3.bf16.msra.mxu1 %v1629_v39 }
 0x102   : > { %1531 = vmatprep.subr.bf16.mxu1 %v1733_v3 }
 0x105   : > { %1532 = vmatpush3.bf16.msra.mxu1 %v1630_v40 }
 0x106   : > { %1533 = vmatprep.subr.bf16.mxu1 %v1733_v3 }
 0x109   : > { %1534 = vmatpush3.bf16.msra.mxu1 %v1631_v54 }
 0x10a   : > { %1535 = vmatprep.subr.bf16.mxu1 %v1733_v3  ;;  %v1392_v3 = vld [vmem:[%s2096_s7] ss:$0 sm:$0xff] }
 0x10d   : > { %1536 = vmatpush3.bf16.msra.mxu1 %v1632_v55 }
 0x1c3   : > { %v1447_v41 = vpop.f32.mrb[0].mxu1 }
 0x1c4   : > { %v1448_v43 = vpop.f32.mrb[1].mxu1 }
 0x1c5   : > { %v1449_v44 = vadd.f32 %v1448_v43, %v1447_v41  ;;  %v1450_v45 = vpop.f32.mrb[2].mxu1 }
 0x1c6   : > { %v1451_v46 = vpop.f32.mrb[3].mxu1 }
 0x1c7   : > { %v698_v47 = vadd.f32 %v1449_v44, %v1366_v42  ;;  %v1452_v48 = vadd.f32 %v1451_v46, %v1450_v45 }
 0x1c9   : > { %704 = vst [vmem:[#allocation3] sm:$0xff] %v698_v47  ;;  %v701_v49 = vadd.f32 %v1452_v48, %v1366_v42  ;;  %v706_v50 = vmax.f32 %v698_v47, 0.0 }
 0x1cb   : > { %705 = vst [vmem:[#allocation3 + $0x8] sm:$0xff] %v701_v49  ;;  %v707_v51 = vmax.f32 %v701_v49, 0.0  ;;  %v748_v52 = vpack.c.bf16 %v701_v49, %v698_v47 }
 0x1cd   : > { %v708_v53 = vpack.c.bf16 %v707_v51, %v706_v50  ;;  %1518 = vmatmul.mubr.bf16.vlgmr.msra.gmra.mrb[4].mxu0 %v748_v52 }
 0x1cf   : > { %713 = vst [vmem:[#allocation2] sm:$0xff] %v708_v53 }
 0x2a0   : > { %v837_v57 = vpop.f32.mrb[4].mxu0 }
 0x2a1   : > { %v838_v58 = vadd.f32 %v1383_v56, %v837_v57  ;;  %v1519_v59 = vpop.f32.mrb[5].mxu0 }
 0x2a2   : > { %v840_v60 = vpop.f32.mrb[6].mxu0 }
 0x2a3   : > { %v841_v61 = vadd.f32 %v1383_v56, %v840_v60  ;;  %v1520_v62 = vpop.f32.mrb[7].mxu0  ;;  %v844_v63 = vmax.f32 %v838_v58, 0.0 }
 0x2a5   : > { %v845_v2 = vmax.f32 %v841_v61, 0.0 }
 0x2a7   : > { %v846_v4 = vpack.c.bf16 %v845_v2, %v844_v63 }
 0x2a9   : > { %1538 = vmatmul.mubr.bf16.vlgmr.msra.gmra.mrb[4].mxu1 %v846_v4 }
 0x37c   : > { %v935_v5 = vpop.f32.mrb[4].mxu1 }
 0x37d   : > { %v936_v6 = vadd.f32 %v1392_v3, %v935_v5  ;;  %v1539_v7 = vpop.f32.mrb[5].mxu1 }
 0x37e   : > { %v938_v8 = vpop.f32.mrb[6].mxu1 }
 0x37f   : > { %942 = vst [vmem:[#allocation5] sm:$0xff] %v936_v6  ;;  %v939_v9 = vadd.f32 %v1392_v3, %v938_v8  ;;  %v1540_v10 = vpop.f32.mrb[7].mxu1 }
 0x381   : > { %943 = vst [vmem:[#allocation5 + $0x8] sm:$0xff] %v939_v9 }
 0x382 PF: > { %p1401_p5 = scmp.ne.s32.totalorder %s1723_s21, 1 }
 0x383   : > { %v953_v11 = vld [vmem:[#allocation2] sm:$0xff] (!%p1401_p5)  ;;  %v1735_v12 = vmov (!%p1401_p5), 0.0   ;;  %vm1736_vm2 = vmmov (!%p1401_p5), 0   ;;  %v1402_v13 = vcombine.low (!%p1401_p5), %v1831_v0, %v1836_v1  ;;  %vm992_vm3 = vcmask (!%p1401_p5), 130048   ;;  %v1635_v16 = vld [vmem:[%s2097_s8 + $0x48] sm:$0xff] (!%p1401_p5)   ;;  %v1637_v1 = vld [vmem:[%s2097_s8 + $0x50] sm:$0xff] (!%p1401_p5)  }
 0x384   : > { %947 = sbr.rel (%p1401_p5) target bundleno = 1341 (0x53d), region = 68  ;;  %1541 = vmatprep.subr.bf16.mxu0 (!%p1401_p5), %v1735_v12  ;;  %1543 = vmatprep.mubr.msk.bf16.mxu0 (!%p1401_p5), %vm1736_vm2, %v1735_v12  ;;  %v1633_v14 = vld [vmem:[%s2097_s8 + $0x40] sm:$0xff] (!%p1401_p5)   ;;  %v1636_v0 = vld [vmem:[%s2097_s8 + $0x8] sm:$0xff] (!%p1401_p5)   ;;  %v1638_v17 = vld [vmem:[%s2097_s8 + $0x10] sm:$0xff] (!%p1401_p5)  }
 0x385   : > { %1542 = vmatpush3.bf16.msra.mxu0 (!%p1401_p5), %v953_v11  ;;  %v1634_v15 = vld [vmem:[%s2097_s8] sm:$0xff] (!%p1401_p5)   ;;  %1473 = vmatprep.subr.bf16.mxu1 (!%p1401_p5), %v1633_v14  ;;  %v1639_v18 = vld [vmem:[%s2097_s8 + $0x58] sm:$0xff] (!%p1401_p5)   ;;  %v1643_v22 = vld [vmem:[%s2097_s8 + $0x68] sm:$0xff] (!%p1401_p5)  }
 0x386   : > { %1474 = vmatpush3.bf16.msra.mxu1 (!%p1401_p5), %v1634_v15  ;;  %v1640_v19 = vld [vmem:[%s2097_s8 + $0x18] sm:$0xff] (!%p1401_p5)   ;;  %v1641_v20 = vld [vmem:[%s2097_s8 + $0x60] sm:$0xff] (!%p1401_p5)   ;;  %v1644_v23 = vld [vmem:[%s2097_s8 + $0x28] sm:$0xff] (!%p1401_p5)  }
 0x387   : > { %1475 = vmatprep.subr.bf16.mxu1 (!%p1401_p5), %v1635_v16  ;;  %v1642_v21 = vld [vmem:[%s2097_s8 + $0x20] sm:$0xff] (!%p1401_p5)   ;;  %v1645_v24 = vld [vmem:[%s2097_s8 + $0x70] sm:$0xff] (!%p1401_p5)   ;;  %v1647_v26 = vld [vmem:[%s2097_s8 + $0x78] sm:$0xff] (!%p1401_p5)  }
 0x388   : > { %1544 = vmatmul.mubr.msk.bf16.vlgmr.msra.gmra.mrb[0].mxu0 (!%p1401_p5), %vm992_vm3, %v1402_v13  ;;  %v1646_v25 = vld [vmem:[%s2097_s8 + $0x30] sm:$0xff] (!%p1401_p5)   ;;  %v1648_v27 = vld [vmem:[%s2097_s8 + $0x38] sm:$0xff] (!%p1401_p5)   ;;  %v1404_v34 = vld [vmem:[%s2098_s9] ss:$0 sm:$0xff] (!%p1401_p5) }
 0x38a   : > { %1476 = vmatpush3.bf16.msra.mxu1 (!%p1401_p5), %v1636_v0 }
 0x38b   : > { %1477 = vmatprep.subr.bf16.mxu1 %v1637_v1 }
 0x38e   : > { %1478 = vmatpush3.bf16.msra.mxu1 %v1638_v17 }
 0x38f   : > { %1479 = vmatprep.subr.bf16.mxu1 %v1639_v18 }
 0x392   : > { %1480 = vmatpush3.bf16.msra.mxu1 %v1640_v19 }
 0x393   : > { %1481 = vmatprep.subr.bf16.mxu1 %v1641_v20 }
 0x396   : > { %1482 = vmatpush3.bf16.msra.mxu1 %v1642_v21 }
 0x397   : > { %1483 = vmatprep.subr.bf16.mxu1 %v1643_v22 }
 0x39a   : > { %1484 = vmatpush3.bf16.msra.mxu1 %v1644_v23 }
 0x39b   : > { %1485 = vmatprep.subr.bf16.mxu1 %v1645_v24 }
 0x39e   : > { %1486 = vmatpush3.bf16.msra.mxu1 %v1646_v25 }
 0x39f   : > { %1487 = vmatprep.subr.bf16.mxu1 %v1647_v26 }
 0x3a2   : > { %1488 = vmatpush3.bf16.msra.mxu1 %v1648_v27 }
 0x45b   : > { %v1030_v28 = vpop.f32.mrb[0].mxu0 }
 0x45c   : > { %v1545_v29 = vpop.f32.mrb[1].mxu0 }
 0x45d   : > { %v1033_v30 = vpop.f32.mrb[2].mxu0 }
 0x45e   : > { %v1546_v31 = vpop.f32.mrb[3].mxu0  ;;  %v1037_v32 = vpack.c.bf16 %v1033_v30, %v1030_v28 }
 0x460   : > { %1172 = vmatprep.mubr.bf16.mxu1 %v1037_v32 }
 0x461   : > { %1173 = vmatmul.mubr.bf16.vlgmr.msra.gmra.mrb[0].mxu1 %v953_v11 }
 0x534   : > { %v1489_v33 = vpop.f32.mrb[0].mxu1 }
 0x535   : > { %v1490_v35 = vpop.f32.mrb[1].mxu1 }
 0x536   : > { %v1491_v36 = vadd.f32 %v1490_v35, %v1489_v33  ;;  %v1492_v37 = vpop.f32.mrb[2].mxu1 }
 0x537   : > { %v1493_v38 = vpop.f32.mrb[3].mxu1 }
 0x538   : > { %v1175_v39 = vadd.f32 %v1491_v36, %v1404_v34  ;;  %v1494_v40 = vadd.f32 %v1493_v38, %v1492_v37 }
 0x53a   : > { %1181 = vst [vmem:[%s2101_s12] sm:$0xff] %v1175_v39  ;;  %v1178_v41 = vadd.f32 %v1494_v40, %v1404_v34 }
 0x53c   : > { %1182 = vst [vmem:[%s2101_s12 + $0x8] sm:$0xff] %v1178_v41 }
 0x53d PF: > { %p2037_p6 = scmp.eq.s32.totalorder %s1357_s24, 1  ;;  %s1737_s15 = smov [#allocation3]  }
 0x53e   : > { %s1210_s16 = sshll.u32 %s1737_s15, 4  ;;  %s1211_s16 = int_to_ptr.vmem [resolvable:$true] %s1210_s16 }
 0x53f   : > { %s1649_s17 = scalar_lea.vmem %s1211_s16, 256  ;;  %s1655_s18 = scalar_lea.vmem %s1211_s16, 512 }
 0x540   : > { %p1650_p7 = scmp.ne.s32.totalorder %s1211_s16, %s1649_s17  ;;  %p1656_p10 = scmp.lt.s32.totalorder %s1211_s16, %s1211_s16 }
 0x541   : > { %p1657_p11 = scmp.lt.s32.totalorder %s1655_s18, %s1649_s17 }
 0x542   : > { %p1651_p8 = pnand %p1650_p7, %p2037_p6 }
 0x543   : > { %p1658_p12 = por %p1657_p11, %p1656_p10 }
 0x544   : > { %p1652_p9 = pneg %p1651_p8 }
 0x546   : > { %p1659_p13 = pnand %p1658_p12, %p1652_p9 }
 0x548   : > { %1662 = shalt.err (!%p1659_p13)
}
 0x549   : > { %s1663_s19 = scalar_lea.hbm %s2099_s10, 256 }
 0x54a   : > { %p1664_p0 = scmp.ne.s32.totalorder %s2099_s10, %s1663_s19  ;;  %p1669_p3 = scmp.lt.u32.totalorder %s1663_s19, %s2099_s10 }
 0x54c   : > { %p1665_p1 = pnand %p1664_p0, %p2037_p6 }
 0x54e   : > { %p1666_p2 = pneg %p1665_p1 }
 0x550   : > { %p1671_p4 = pnand %p1669_p3, %p1666_p2 }
 0x552   : > { %1674 = shalt.err (!%p1671_p4)
}
 0x553   : > { %s1738_s30 = smov 128   ;;  %s1739_s13 = smov 8  }
 0x554   : > { %1548 = dma.vmem_to_hbm [thread:$0]  (%p2037_p6), %s1211_s16, 256, %s2099_s10, [#allocation4], %s1738_s30, %s1738_s30, %s1739_s13  }
 0x555   : > { %s1740_s18 = smov [#allocation5]  }
 0x556   : > { %s1228_s21 = sshll.u32 %s1740_s18, 4  ;;  %s1229_s21 = int_to_ptr.vmem [resolvable:$true] %s1228_s21 }
 0x557   : > { %s1675_s24 = scalar_lea.vmem %s1229_s21, 256  ;;  %s1681_s19 = scalar_lea.vmem %s1229_s21, 512 }
 0x558   : > { %p1676_p5 = scmp.ne.s32.totalorder %s1229_s21, %s1675_s24  ;;  %p1682_p9 = scmp.lt.s32.totalorder %s1229_s21, %s1229_s21 }
 0x559   : > { %p1683_p10 = scmp.lt.s32.totalorder %s1681_s19, %s1675_s24 }
 0x55a   : > { %p1677_p7 = pnand %p1676_p5, %p2037_p6 }
 0x55b   : > { %p1684_p11 = por %p1683_p10, %p1682_p9 }
 0x55c   : > { %p1678_p8 = pneg %p1677_p7 }
 0x55e   : > { %p1685_p12 = pnand %p1684_p11, %p1678_p8 }
 0x560   : > { %1688 = shalt.err (!%p1685_p12)
}
 0x561   : > { %s1689_s28 = scalar_lea.hbm %s2100_s11, 256 }
 0x562   : > { %p1690_p13 = scmp.ne.s32.totalorder %s2100_s11, %s1689_s28  ;;  %p1695_p2 = scmp.lt.u32.totalorder %s1689_s28, %s2100_s11 }
 0x564   : > { %p1691_p0 = pnand %p1690_p13, %p2037_p6 }
 0x566   : > { %p1692_p1 = pneg %p1691_p0 }
 0x568   : > { %p1697_p3 = pnand %p1695_p2, %p1692_p1 }
 0x56a   : > { %1700 = shalt.err (!%p1697_p3)
}
 0x56b   : > { %1550 = dma.vmem_to_hbm [thread:$0]  (%p2037_p6), %s1229_s21, 256, %s2100_s11, [#allocation6], %s1738_s30, %s1738_s30, %s1739_s13  }
 0x56c PF: > { %p1564_p4 = scmp.ge.s32.totalorder %s1731_s23, 2  ;;  %p1565_p5 = scmp.eq.s32.totalorder %s1358_s25, 1 }
 0x56e   : > { %p1556_p7 = pnand %p1565_p5, %p1564_p4 }
 0x570   : > { %1714 = dma.done.wait (!%p1556_p7), [#allocation4], 256  }
 0x571   : > { %1716 = vsyncadd (!%p1556_p7), [#allocation4], 4294967040 }
 0x572   : > { %1718 = dma.done.wait (!%p1556_p7), [#allocation6], 256  }
 0x573   : > { %1720 = vsyncadd (!%p1556_p7), [#allocation6], 4294967040  ;;  %s29_s23 = sadd.s32 1, %s1731_s23   ;;  %s2103_s21 = smov %s1727_s22 }
 0x574   : > { %p26_p8 = scmp.ge.s32.totalorder %s29_s23, 4   ;;  %s2104_s22 = smov %s2106_s26 }
 0x576   :  { %28 = sbr.rel (!%p26_p8) target bundleno = 5 (0x5), region = 133 }
 0x57d   :  { %1272 = vsyncpa [#allocation4], 1 }
 0x57e   :  { %1274 = vsyncpa [#allocation4 + $0x1], 1 }
 0x57f   :  { %1275 = vsyncpa [#allocation6], 1 }
 0x580   :  { %1277 = vsyncpa [#allocation6 + $0x1], 1 }

</bundles_post_ra>
